<compile_context>
chip_gen: v7x
topology: tpu7x:2x2x1
jax: 0.10.0
libtpu: 0.0.40
codegen_flags: <defaults>
</compile_context>

<pallas_src>
import functools
import math

import jax
import jax.numpy as jnp
from jax.experimental import pallas as pl
from jax.experimental.pallas import tpu as pltpu


_LANE = 128
_SUBLANE = 8
_MXU_M = 256          # full M tile on v6e/v7x MXU; also a multiple of v5e's 128


def _round_up(x, m):
    return ((x + m - 1) // m) * m


def _vmem_capacity_bytes():
    """Physical per-core VMEM (64 MiB on v7x, 128 MiB on v5e/v6e)."""
    try:
        info = pltpu.get_tpu_info()
        cap = int(getattr(info, "vmem_capacity_bytes", 0))
        if cap > 0:
            return cap
    except Exception:
        pass
    return 64 * 1024 * 1024   # conservative default (v7x per-TensorCore VMEM)


# --------------------------------------------------------------------------- #
# Fused kernel: all weights VMEM-resident, batch tiled over a 1-D grid.
# --------------------------------------------------------------------------- #
def _mlp_kernel(*refs, num_layers, leaky, bf16_elementwise):
    """refs = (x_ref, w0, b0, w1, b1, ..., w_{L-1}, b_{L-1}, out_ref)."""
    x_ref = refs[0]
    out_ref = refs[-1]
    params = refs[1:-1]

    h = x_ref[...]
    if h.dtype not in (jnp.float32, jnp.bfloat16):
        h = h.astype(jnp.float32)

    for layer in range(num_layers):
        w_ref = params[2 * layer]
        b_ref = params[2 * layer + 1]
        last = layer == num_layers - 1

        # Feed the MXU in the weights' native dtype (bf16 weights stay bf16),
        # always accumulate in f32.
        lhs = h if h.dtype == w_ref.dtype else h.astype(w_ref.dtype)
        acc = jnp.dot(lhs, w_ref[...], preferred_element_type=jnp.float32)

        # Elementwise tail: f32 by default; optionally bf16 on hidden layers
        # when weights are bf16 (v6e/v7x have a bf16 VALU; keep False on v5e).
        if bf16_elementwise and (w_ref.dtype == jnp.bfloat16) and not last:
            h = acc.astype(jnp.bfloat16) + b_ref[...].astype(jnp.bfloat16)
        else:
            h = acc + b_ref[...].astype(jnp.float32)

        if not last:
            if leaky == 0.0:
                h = jnp.maximum(h, 0.0)               # plain ReLU: single VPU max
            else:
                h = jnp.where(h >= 0, h, leaky * h)   # LeakyReLU

    out_ref[...] = h.astype(out_ref.dtype)


def _resident_spec(arr, single_buffer):
    """Full-array block with a constant index map (VMEM-resident across the grid)."""
    zeros = (0,) * arr.ndim
    idx = lambda i, _z=zeros: _z
    if single_buffer:
        try:
            # Constant block index -> double buffering is pure VMEM waste.
            return pl.BlockSpec(arr.shape, idx, pipeline_mode=pl.Buffered(1))
        except TypeError:
            pass
    return pl.BlockSpec(arr.shape, idx)


def _x_spec(block_shape, buffers):
    idx = lambda i: (i, 0)
    if buffers != 2:
        try:
            return pl.BlockSpec(block_shape, idx, pipeline_mode=pl.Buffered(buffers))
        except TypeError:
            pass
    return pl.BlockSpec(block_shape, idx)


def _choose_tb(batch, block_batch, widest_dim):
    """Batch tile: MXU-M aligned, >= 2 tiles when the batch permits (v7x megacore),
    capped when hidden dims are wide to bound the per-layer live set."""
    b8 = _round_up(batch, _SUBLANE)
    cap = 256 if widest_dim >= 2048 else max(_round_up(block_batch, _MXU_M), _MXU_M)
    if b8 <= cap:
        # Split into two MXU-worthy tiles when possible so the "parallel" axis
        # can shard across v7x's two TensorCores; otherwise one tile.
        if b8 >= 2 * 128:
            return _round_up(pl.cdiv(b8, 2), _SUBLANE)
        return b8
    return cap


def _fused_call(x_p, weights_p, biases_p, *, TB, leaky, bf16_elementwise,
                vmem_limit, x_buffers):
    B_pad, in_pad = x_p.shape
    out_pad = weights_p[-1].shape[1]
    num_layers = len(weights_p)

    args = [x_p]
    for w, b in zip(weights_p, biases_p):
        args.append(w)
        args.append(b)

    flops = 2 * B_pad * sum(w.shape[0] * w.shape[1] for w in weights_p)
    bytes_accessed = (sum(a.size * a.dtype.itemsize for a in args)
                      + B_pad * out_pad * x_p.dtype.itemsize)
    cost = pl.CostEstimate(flops=flops, transcendentals=0,
                           bytes_accessed=bytes_accessed)

    kernel = functools.partial(_mlp_kernel, num_layers=num_layers, leaky=leaky,
                               bf16_elementwise=bf16_elementwise)
    grid = (B_pad // TB,)

    def build_and_run(single_buffer):
        in_specs = [_x_spec((TB, in_pad), x_buffers)]
        in_specs += [_resident_spec(a, single_buffer) for a in args[1:]]
        out_spec = pl.BlockSpec((TB, out_pad), lambda i: (i, 0))
        return pl.pallas_call(
            kernel,
            out_shape=jax.ShapeDtypeStruct((B_pad, out_pad), x_p.dtype),
            grid=grid,
            in_specs=in_specs,
            out_specs=out_spec,
            compiler_params=pltpu.CompilerParams(
                dimension_semantics=("parallel",),     # independent batch tiles
                vmem_limit_bytes=int(vmem_limit)),
            cost_estimate=cost,
        )(*args)

    try:
        return build_and_run(True)
    except Exception:
        # pl.Buffered(1) not supported on this jax/libtpu: fall back to the
        # default double-buffered resident specs (same semantics).
        return build_and_run(False)


# --------------------------------------------------------------------------- #
# Streamed fallback: one (M,N,K)-tiled matmul+bias+activation call per layer,
# used when the resident-weights working set does not fit the VMEM budget.
# --------------------------------------------------------------------------- #
def _linear_act_kernel(x_ref, w_ref, b_ref, o_ref, acc_ref, *, apply_act, leaky):
    k = pl.program_id(2)

    @pl.when(k == 0)
    def _init():
        acc_ref[...] = jnp.zeros_like(acc_ref)

    lhs = x_ref[...]
    if lhs.dtype != w_ref.dtype:
        lhs = lhs.astype(w_ref.dtype)
    acc_ref[...] += jnp.dot(lhs, w_ref[...], preferred_element_type=jnp.float32)

    @pl.when(k == pl.num_programs(2) - 1)
    def _finish():
        h = acc_ref[...] + b_ref[...].astype(jnp.float32)
        if apply_act:
            if leaky == 0.0:
                h = jnp.maximum(h, 0.0)
            else:
                h = jnp.where(h >= 0, h, leaky * h)
        o_ref[...] = h.astype(o_ref.dtype)


def _pick_tile(dim_pad, pref=512):
    t = min(dim_pad, pref)
    t = max((t // _LANE) * _LANE, _LANE)
    while dim_pad % t:
        t -= _LANE
    return t


def _linear_layer(h, w, b, *, tm, apply_act, leaky, vmem_limit):
    M, K = h.shape
    N = w.shape[1]
    tk = _pick_tile(K)
    tn = _pick_tile(N)
    kernel = functools.partial(_linear_act_kernel, apply_act=apply_act, leaky=leaky)
    return pl.pallas_call(
        kernel,
        out_shape=jax.ShapeDtypeStruct((M, N), h.dtype),
        grid=(M // tm, N // tn, K // tk),
        in_specs=[pl.BlockSpec((tm, tk), lambda i, j, k: (i, k)),
                  pl.BlockSpec((tk, tn), lambda i, j, k: (k, j)),
                  pl.BlockSpec((1, tn), lambda i, j, k: (0, j))],
        out_specs=pl.BlockSpec((tm, tn), lambda i, j, k: (i, j)),
        scratch_shapes=[pltpu.VMEM((tm, tn), jnp.float32)],
        compiler_params=pltpu.CompilerParams(
            dimension_semantics=("parallel", "parallel", "arbitrary"),
            vmem_limit_bytes=int(vmem_limit)),
    )(h, w, b)


def _streamed_forward(x, weights_p, biases_p, in_pad, *, leaky, vmem_limit):
    B, in_dim = x.shape
    tm = min(_round_up(B, _SUBLANE), _MXU_M)
    M_pad = _round_up(B, tm)
    if M_pad != B or in_pad != in_dim:
        x = jnp.pad(x, ((0, M_pad - B), (0, in_pad - in_dim)))
    h = x
    num_layers = len(weights_p)
    for k, (w, b) in enumerate(zip(weights_p, biases_p)):
        h = _linear_layer(h, w, b, tm=tm, apply_act=(k < num_layers - 1),
                          leaky=leaky, vmem_limit=vmem_limit)
    return h


# --------------------------------------------------------------------------- #
# Public wrapper
# --------------------------------------------------------------------------- #
def mlp_forward(x, weights, biases, leaky=0.0, block_batch=256,
                bf16_elementwise=False, x_buffers=2, force_streamed=False):
    """Fused MLP forward.

    x:       (B, layers[0]) float32 (or bf16)
    weights: list of (layers[k], layers[k+1]) arrays (already transposed vs torch)
    biases:  list of (layers[k+1],) or (1, layers[k+1]) arrays
    """
    B, in_dim = x.shape
    out_dim = weights[-1].shape[1]

    # --- pad EVERY feature dim to a multiple of 128 lanes; exact because padded
    #     weight rows/cols and bias entries are zero and ReLU/LeakyReLU(0) == 0.
    dims = [in_dim] + [w.shape[1] for w in weights]
    dims_pad = [_round_up(d, _LANE) for d in dims]

    weights_p, biases_p = [], []
    for k, (w, b) in enumerate(zip(weights, biases)):
        b = jnp.asarray(b).reshape(1, -1)
        pr = dims_pad[k] - w.shape[0]
        pc = dims_pad[k + 1] - w.shape[1]
        if pr or pc:
            w = jnp.pad(w, ((0, pr), (0, pc)))
        if pc:
            b = jnp.pad(b, ((0, 0), (0, pc)))
        weights_p.append(w)
        biases_p.append(b)

    widest = max(dims_pad)
    itemsize = x.dtype.itemsize
    param_bytes = sum(a.size * a.dtype.itemsize for a in weights_p + biases_p)

    # --- VMEM budget from the actual chip (64 MiB/TC on v7x, 128 MiB v5e/v6e).
    budget = int(0.8 * _vmem_capacity_bytes())

    def need(tb):
        io_tiles = 2 * tb * (dims_pad[0] + dims_pad[-1]) * itemsize  # dbl-buffered x/out
        live = 2 * tb * widest * 4                                   # f32 activations
        return 2 * param_bytes + io_tiles + live     # conservative: params x 2 buffers

    TB = _choose_tb(B, block_batch, widest)
    while need(TB) > budget and TB > _SUBLANE:
        TB = max(_SUBLANE, _round_up(TB // 2, _SUBLANE))

    if force_streamed or need(TB) > budget:
        # Weights do not fit VMEM (or user asked): stream weight tiles per layer.
        out = _streamed_forward(x, weights_p, biases_p, dims_pad[0],
                                leaky=leaky, vmem_limit=budget)
        return out[:B, :out_dim]

    B_pad = _round_up(B, TB)
    if B_pad != B or dims_pad[0] != in_dim:
        x = jnp.pad(x, ((0, B_pad - B), (0, dims_pad[0] - in_dim)))

    vmem_limit = min(budget, max(32 * 1024 * 1024, 2 * need(TB)))

    out = _fused_call(x, weights_p, biases_p, TB=TB, leaky=leaky,
                      bf16_elementwise=bf16_elementwise,
                      vmem_limit=vmem_limit, x_buffers=x_buffers)
    return out[:B, :out_dim]


def init_mlp_params(key, layers, init_zeros=False):
    """Deterministic init mimicking torch.nn.Linear default (uniform +/- 1/sqrt(fan_in))."""
    weights, biases = [], []
    for k in range(len(layers) - 1):
        fan_in, fan_out = layers[k], layers[k + 1]
        key, kw, kb = jax.random.split(key, 3)
        bound = 1.0 / math.sqrt(fan_in)
        if init_zeros and k == len(layers) - 2:
            w = jnp.zeros((fan_in, fan_out), jnp.float32)
            b = jnp.zeros((1, fan_out), jnp.float32)
        else:
            w = jax.random.uniform(kw, (fan_in, fan_out), jnp.float32,
                                   minval=-bound, maxval=bound)
            b = jax.random.uniform(kb, (1, fan_out), jnp.float32,
                                   minval=-bound, maxval=bound)
        weights.append(w)
        biases.append(b)
    return weights, biases


def mlp_reference(x, weights, biases, leaky=0.0):
    h = x
    for k, (w, b) in enumerate(zip(weights, biases)):
        h = h @ w + jnp.asarray(b).reshape(1, -1)
        if k < len(weights) - 1:
            h = jnp.where(h >= 0, h, leaky * h)
    return h


# TODO(synk): training-mode nn.Dropout and the optional output_fn / score_scale /
# output_scale heads are not exercised (module defaults: dropout=None,
# output_fn=None); they would be a simple extra elementwise tail in the kernel.

if __name__ == "__main__":
    layers = [16, 32, 32, 8]   # list of layer sizes from start to end

    key = jax.random.PRNGKey(0)
    key, kx1, kx2 = jax.random.split(key, 3)
    weights, biases = init_mlp_params(key, layers)

    # (1) small odd batch, f32, ReLU (module defaults) -- fused path, grid = 1
    x1 = jax.random.normal(kx1, (50, layers[0]), jnp.float32)
    out1 = jax.block_until_ready(mlp_forward(x1, weights, biases, leaky=0.0))
    ref1 = mlp_reference(x1, weights, biases, leaky=0.0)
    assert out1.shape == (50, layers[-1])
    assert jnp.allclose(out1, ref1, atol=1e-5, rtol=1e-5), "f32 mismatch vs reference"

    # (2) bf16 weights (MXU-native) + bf16 elementwise tail (v6e/v7x option)
    w_bf16 = [w.astype(jnp.bfloat16) for w in weights]
    b_bf16 = [b.astype(jnp.bfloat16) for b in biases]
    out2 = jax.block_until_ready(
        mlp_forward(x1, w_bf16, b_bf16, leaky=0.0, bf16_elementwise=True))
    ref2 = mlp_reference(x1, [w.astype(jnp.float32) for w in w_bf16],
                         [b.astype(jnp.float32) for b in b_bf16], leaky=0.0)
    assert jnp.allclose(out2, ref2, atol=1e-1, rtol=1e-1), "bf16 mismatch"

    # (3) larger batch + leaky slope -- multi-tile "parallel" grid (>= 2 tiles)
    x2 = jax.random.normal(kx2, (384, layers[0]), jnp.float32)
    out3 = jax.block_until_ready(mlp_forward(x2, weights, biases, leaky=0.01))
    ref3 = mlp_reference(x2, weights, biases, leaky=0.01)
    assert out3.shape == (384, layers[-1])
    assert jnp.allclose(out3, ref3, atol=1e-5, rtol=1e-5), "leaky mismatch"

    # (4) streamed fallback path (per-layer tiled matmul, weights not resident)
    out4 = jax.block_until_ready(
        mlp_forward(x1, weights, biases, leaky=0.0, force_streamed=True))
    assert jnp.allclose(out4, ref1, atol=1e-5, rtol=1e-5), "streamed fallback mismatch"

    print("KERNEL_OK")
</pallas_src>

<mosaic_0001>
module attributes {stable_mosaic.version = 11 : i64} {
  func.func @_mlp_kernel(%arg0: i32, %arg1: memref<56x128xf32, #tpu.memory_space<vmem>>, %arg2: memref<128x128xf32, #tpu.memory_space<vmem>>, %arg3: memref<1x128xf32, #tpu.memory_space<vmem>>, %arg4: memref<128x128xf32, #tpu.memory_space<vmem>>, %arg5: memref<1x128xf32, #tpu.memory_space<vmem>>, %arg6: memref<128x128xf32, #tpu.memory_space<vmem>>, %arg7: memref<1x128xf32, #tpu.memory_space<vmem>>, %arg8: memref<56x128xf32, #tpu.memory_space<vmem>>) attributes {dimension_semantics = [#tpu.dimension_semantics<parallel>], iteration_bounds = array<i64: 1>, scalar_prefetch = 0 : i64, scratch_operands = 0 : i64, tpu.core_type = #tpu.core_type<tc>, window_params = [{transform_indices = @transform_0, window_bounds = array<i64: 56, 128>}, {pipeline_mode = #tpu.pipeline_mode<synchronous>, transform_indices = @transform_1, window_bounds = array<i64: 128, 128>}, {pipeline_mode = #tpu.pipeline_mode<synchronous>, transform_indices = @transform_2, window_bounds = array<i64: 1, 128>}, {pipeline_mode = #tpu.pipeline_mode<synchronous>, transform_indices = @transform_3, window_bounds = array<i64: 128, 128>}, {pipeline_mode = #tpu.pipeline_mode<synchronous>, transform_indices = @transform_4, window_bounds = array<i64: 1, 128>}, {pipeline_mode = #tpu.pipeline_mode<synchronous>, transform_indices = @transform_5, window_bounds = array<i64: 128, 128>}, {pipeline_mode = #tpu.pipeline_mode<synchronous>, transform_indices = @transform_6, window_bounds = array<i64: 1, 128>}, {transform_indices = @transform_7, window_bounds = array<i64: 56, 128>}]} {
    %c0 = arith.constant 0 : index
    %c0_0 = arith.constant 0 : index
    %0 = vector.load %arg1[%c0, %c0_0] : memref<56x128xf32, #tpu.memory_space<vmem>>, vector<56x128xf32>
    %c0_1 = arith.constant 0 : index
    %c0_2 = arith.constant 0 : index
    %1 = vector.load %arg2[%c0_1, %c0_2] : memref<128x128xf32, #tpu.memory_space<vmem>>, vector<128x128xf32>
    %cst = arith.constant dense<0.000000e+00> : vector<56x128xf32>
    %2 = tpu.matmul %0, %1, %cst {dimension_numbers = #tpu.dot_dimension_numbers<[1], [0], [0], [1], [0, 0, 1, 1], [], []>} : vector<56x128xf32>, vector<128x128xf32>, vector<56x128xf32> -> vector<56x128xf32>
    %c0_3 = arith.constant 0 : index
    %c0_4 = arith.constant 0 : index
    %3 = vector.load %arg3[%c0_3, %c0_4] : memref<1x128xf32, #tpu.memory_space<vmem>>, vector<1x128xf32>
    %4 = vector.broadcast %3 : vector<1x128xf32> to vector<56x128xf32>
    %5 = arith.addf %2, %4 : vector<56x128xf32>
    %cst_5 = arith.constant 0.000000e+00 : f32
    %6 = vector.broadcast %cst_5 : f32 to vector<56x128xf32>
    %7 = arith.maximumf %5, %6 : vector<56x128xf32>
    %c0_6 = arith.constant 0 : index
    %c0_7 = arith.constant 0 : index
    %8 = vector.load %arg4[%c0_6, %c0_7] : memref<128x128xf32, #tpu.memory_space<vmem>>, vector<128x128xf32>
    %cst_8 = arith.constant dense<0.000000e+00> : vector<56x128xf32>
    %9 = tpu.matmul %7, %8, %cst_8 {dimension_numbers = #tpu.dot_dimension_numbers<[1], [0], [0], [1], [0, 0, 1, 1], [], []>} : vector<56x128xf32>, vector<128x128xf32>, vector<56x128xf32> -> vector<56x128xf32>
    %c0_9 = arith.constant 0 : index
    %c0_10 = arith.constant 0 : index
    %10 = vector.load %arg5[%c0_9, %c0_10] : memref<1x128xf32, #tpu.memory_space<vmem>>, vector<1x128xf32>
    %11 = vector.broadcast %10 : vector<1x128xf32> to vector<56x128xf32>
    %12 = arith.addf %9, %11 : vector<56x128xf32>
    %cst_11 = arith.constant 0.000000e+00 : f32
    %13 = vector.broadcast %cst_11 : f32 to vector<56x128xf32>
    %14 = arith.maximumf %12, %13 : vector<56x128xf32>
    %c0_12 = arith.constant 0 : index
    %c0_13 = arith.constant 0 : index
    %15 = vector.load %arg6[%c0_12, %c0_13] : memref<128x128xf32, #tpu.memory_space<vmem>>, vector<128x128xf32>
    %cst_14 = arith.constant dense<0.000000e+00> : vector<56x128xf32>
    %16 = tpu.matmul %14, %15, %cst_14 {dimension_numbers = #tpu.dot_dimension_numbers<[1], [0], [0], [1], [0, 0, 1, 1], [], []>} : vector<56x128xf32>, vector<128x128xf32>, vector<56x128xf32> -> vector<56x128xf32>
    %c0_15 = arith.constant 0 : index
    %c0_16 = arith.constant 0 : index
    %17 = vector.load %arg7[%c0_15, %c0_16] : memref<1x128xf32, #tpu.memory_space<vmem>>, vector<1x128xf32>
    %18 = vector.broadcast %17 : vector<1x128xf32> to vector<56x128xf32>
    %19 = arith.addf %16, %18 : vector<56x128xf32>
    %c0_17 = arith.constant 0 : index
    %c0_18 = arith.constant 0 : index
    %20 = vector.load %arg8[%c0_17, %c0_18] : memref<56x128xf32, #tpu.memory_space<vmem>>, vector<56x128xf32>
    tpu.vector_store %arg8[%c0_17, %c0_18], %19 {strides = array<i32>} : memref<56x128xf32, #tpu.memory_space<vmem>>, vector<56x128xf32>,
    return
  }
  func.func @transform_0(%arg0: i32) -> (i32, i32) {
    %c0_i32 = arith.constant 0 : i32
    %c0_i32_0 = arith.constant 0 : i32
    return %arg0, %c0_i32 : i32, i32
  }
  func.func @transform_1(%arg0: i32) -> (i32, i32) {
    %c0_i32 = arith.constant 0 : i32
    %c0_i32_0 = arith.constant 0 : i32
    %c0_i32_1 = arith.constant 0 : i32
    return %c0_i32, %c0_i32_0 : i32, i32
  }
  func.func @transform_2(%arg0: i32) -> (i32, i32) {
    %c0_i32 = arith.constant 0 : i32
    %c0_i32_0 = arith.constant 0 : i32
    %c0_i32_1 = arith.constant 0 : i32
    return %c0_i32, %c0_i32_0 : i32, i32
  }
  func.func @transform_3(%arg0: i32) -> (i32, i32) {
    %c0_i32 = arith.constant 0 : i32
    %c0_i32_0 = arith.constant 0 : i32
    %c0_i32_1 = arith.constant 0 : i32
    return %c0_i32, %c0_i32_0 : i32, i32
  }
  func.func @transform_4(%arg0: i32) -> (i32, i32) {
    %c0_i32 = arith.constant 0 : i32
    %c0_i32_0 = arith.constant 0 : i32
    %c0_i32_1 = arith.constant 0 : i32
    return %c0_i32, %c0_i32_0 : i32, i32
  }
  func.func @transform_5(%arg0: i32) -> (i32, i32) {
    %c0_i32 = arith.constant 0 : i32
    %c0_i32_0 = arith.constant 0 : i32
    %c0_i32_1 = arith.constant 0 : i32
    return %c0_i32, %c0_i32_0 : i32, i32
  }
  func.func @transform_6(%arg0: i32) -> (i32, i32) {
    %c0_i32 = arith.constant 0 : i32
    %c0_i32_0 = arith.constant 0 : i32
    %c0_i32_1 = arith.constant 0 : i32
    return %c0_i32, %c0_i32_0 : i32, i32
  }
  func.func @transform_7(%arg0: i32) -> (i32, i32) {
    %c0_i32 = arith.constant 0 : i32
    %c0_i32_0 = arith.constant 0 : i32
    return %arg0, %c0_i32 : i32, i32
  }
}

module attributes {stable_mosaic.version = 11 : i64} {
  func.func @_mlp_kernel(%arg0: i32, %arg1: memref<56x128xf32, #tpu.memory_space<vmem>>, %arg2: memref<128x128xf32, #tpu.memory_space<vmem>>, %arg3: memref<1x128xf32, #tpu.memory_space<vmem>>, %arg4: memref<128x128xf32, #tpu.memory_space<vmem>>, %arg5: memref<1x128xf32, #tpu.memory_space<vmem>>, %arg6: memref<128x128xf32, #tpu.memory_space<vmem>>, %arg7: memref<1x128xf32, #tpu.memory_space<vmem>>, %arg8: memref<56x128xf32, #tpu.memory_space<vmem>>) attributes {dimension_semantics = [#tpu.dimension_semantics<parallel>], iteration_bounds = array<i64: 1>, scalar_prefetch = 0 : i64, scratch_operands = 0 : i64, tpu.core_type = #tpu.core_type<tc>, window_params = [{transform_indices = @transform_0, window_bounds = array<i64: 56, 128>}, {pipeline_mode = #tpu.pipeline_mode<synchronous>, transform_indices = @transform_1, window_bounds = array<i64: 128, 128>}, {pipeline_mode = #tpu.pipeline_mode<synchronous>, transform_indices = @transform_2, window_bounds = array<i64: 1, 128>}, {pipeline_mode = #tpu.pipeline_mode<synchronous>, transform_indices = @transform_3, window_bounds = array<i64: 128, 128>}, {pipeline_mode = #tpu.pipeline_mode<synchronous>, transform_indices = @transform_4, window_bounds = array<i64: 1, 128>}, {pipeline_mode = #tpu.pipeline_mode<synchronous>, transform_indices = @transform_5, window_bounds = array<i64: 128, 128>}, {pipeline_mode = #tpu.pipeline_mode<synchronous>, transform_indices = @transform_6, window_bounds = array<i64: 1, 128>}, {transform_indices = @transform_7, window_bounds = array<i64: 56, 128>}]} {
    %c0 = arith.constant 0 : index
    %c0_0 = arith.constant 0 : index
    %0 = vector.load %arg1[%c0, %c0_0] : memref<56x128xf32, #tpu.memory_space<vmem>>, vector<56x128xf32>
    %c0_1 = arith.constant 0 : index
    %c0_2 = arith.constant 0 : index
    %1 = vector.load %arg2[%c0_1, %c0_2] : memref<128x128xf32, #tpu.memory_space<vmem>>, vector<128x128xf32>
    %cst = arith.constant dense<0.000000e+00> : vector<56x128xf32>
    %2 = tpu.matmul %0, %1, %cst {dimension_numbers = #tpu.dot_dimension_numbers<[1], [0], [0], [1], [0, 0, 1, 1], [], []>} : vector<56x128xf32>, vector<128x128xf32>, vector<56x128xf32> -> vector<56x128xf32>
    %c0_3 = arith.constant 0 : index
    %c0_4 = arith.constant 0 : index
    %3 = vector.load %arg3[%c0_3, %c0_4] : memref<1x128xf32, #tpu.memory_space<vmem>>, vector<1x128xf32>
    %4 = vector.broadcast %3 : vector<1x128xf32> to vector<56x128xf32>
    %5 = arith.addf %2, %4 : vector<56x128xf32>
    %cst_5 = arith.constant 0.000000e+00 : f32
    %6 = vector.broadcast %cst_5 : f32 to vector<56x128xf32>
    %7 = arith.maximumf %5, %6 : vector<56x128xf32>
    %c0_6 = arith.constant 0 : index
    %c0_7 = arith.constant 0 : index
    %8 = vector.load %arg4[%c0_6, %c0_7] : memref<128x128xf32, #tpu.memory_space<vmem>>, vector<128x128xf32>
    %cst_8 = arith.constant dense<0.000000e+00> : vector<56x128xf32>
    %9 = tpu.matmul %7, %8, %cst_8 {dimension_numbers = #tpu.dot_dimension_numbers<[1], [0], [0], [1], [0, 0, 1, 1], [], []>} : vector<56x128xf32>, vector<128x128xf32>, vector<56x128xf32> -> vector<56x128xf32>
    %c0_9 = arith.constant 0 : index
    %c0_10 = arith.constant 0 : index
    %10 = vector.load %arg5[%c0_9, %c0_10] : memref<1x128xf32, #tpu.memory_space<vmem>>, vector<1x128xf32>
    %11 = vector.broadcast %10 : vector<1x128xf32> to vector<56x128xf32>
    %12 = arith.addf %9, %11 : vector<56x128xf32>
    %cst_11 = arith.constant 0.000000e+00 : f32
    %13 = vector.broadcast %cst_11 : f32 to vector<56x128xf32>
    %14 = arith.maximumf %12, %13 : vector<56x128xf32>
    %c0_12 = arith.constant 0 : index
    %c0_13 = arith.constant 0 : index
    %15 = vector.load %arg6[%c0_12, %c0_13] : memref<128x128xf32, #tpu.memory_space<vmem>>, vector<128x128xf32>
    %cst_14 = arith.constant dense<0.000000e+00> : vector<56x128xf32>
    %16 = tpu.matmul %14, %15, %cst_14 {dimension_numbers = #tpu.dot_dimension_numbers<[1], [0], [0], [1], [0, 0, 1, 1], [], []>} : vector<56x128xf32>, vector<128x128xf32>, vector<56x128xf32> -> vector<56x128xf32>
    %c0_15 = arith.constant 0 : index
    %c0_16 = arith.constant 0 : index
    %17 = vector.load %arg7[%c0_15, %c0_16] : memref<1x128xf32, #tpu.memory_space<vmem>>, vector<1x128xf32>
    %18 = vector.broadcast %17 : vector<1x128xf32> to vector<56x128xf32>
    %19 = arith.addf %16, %18 : vector<56x128xf32>
    %c0_17 = arith.constant 0 : index
    %c0_18 = arith.constant 0 : index
    %20 = vector.load %arg8[%c0_17, %c0_18] : memref<56x128xf32, #tpu.memory_space<vmem>>, vector<56x128xf32>
    tpu.vector_store %arg8[%c0_17, %c0_18], %19 {strides = array<i32>} : memref<56x128xf32, #tpu.memory_space<vmem>>, vector<56x128xf32>,
    return
  }
  func.func @transform_0(%arg0: i32) -> (i32, i32) {
    %c0_i32 = arith.constant 0 : i32
    %c0_i32_0 = arith.constant 0 : i32
    return %arg0, %c0_i32 : i32, i32
  }
  func.func @transform_1(%arg0: i32) -> (i32, i32) {
    %c0_i32 = arith.constant 0 : i32
    %c0_i32_0 = arith.constant 0 : i32
    %c0_i32_1 = arith.constant 0 : i32
    return %c0_i32, %c0_i32_0 : i32, i32
  }
  func.func @transform_2(%arg0: i32) -> (i32, i32) {
    %c0_i32 = arith.constant 0 : i32
    %c0_i32_0 = arith.constant 0 : i32
    %c0_i32_1 = arith.constant 0 : i32
    return %c0_i32, %c0_i32_0 : i32, i32
  }
  func.func @transform_3(%arg0: i32) -> (i32, i32) {
    %c0_i32 = arith.constant 0 : i32
    %c0_i32_0 = arith.constant 0 : i32
    %c0_i32_1 = arith.constant 0 : i32
    return %c0_i32, %c0_i32_0 : i32, i32
  }
  func.func @transform_4(%arg0: i32) -> (i32, i32) {
    %c0_i32 = arith.constant 0 : i32
    %c0_i32_0 = arith.constant 0 : i32
    %c0_i32_1 = arith.constant 0 : i32
    return %c0_i32, %c0_i32_0 : i32, i32
  }
  func.func @transform_5(%arg0: i32) -> (i32, i32) {
    %c0_i32 = arith.constant 0 : i32
    %c0_i32_0 = arith.constant 0 : i32
    %c0_i32_1 = arith.constant 0 : i32
    return %c0_i32, %c0_i32_0 : i32, i32
  }
  func.func @transform_6(%arg0: i32) -> (i32, i32) {
    %c0_i32 = arith.constant 0 : i32
    %c0_i32_0 = arith.constant 0 : i32
    %c0_i32_1 = arith.constant 0 : i32
    return %c0_i32, %c0_i32_0 : i32, i32
  }
  func.func @transform_7(%arg0: i32) -> (i32, i32) {
    %c0_i32 = arith.constant 0 : i32
    %c0_i32_0 = arith.constant 0 : i32
    return %arg0, %c0_i32 : i32, i32
  }
}

</mosaic_0001>

<bundles_post_ra>
// kernel: tpu_custom_call.1
= control target key start
LH: loop header
LB: loop body
LE: loop exit
PB: predicated region body
PF: predicated region fallthrough
CT: control target
= control target key end

     0   :  { %12 = vsyncpa [#allocation3], 0  ;;  %s1167_s0 = inlined_call_operand.hbm [shape: f32[56,128], index: 0, kind: input, shape index: {}]   ;;  %s1168_s1 = inlined_call_operand.hbm [shape: f32[128,128], index: 1, kind: input, shape index: {}]   ;;  %s1169_s2 = inlined_call_operand.vmem [shape: f32[1,128], index: 2, kind: input, shape index: {}]   ;;  %s1170_s3 = inlined_call_operand.hbm [shape: f32[128,128], index: 3, kind: input, shape index: {}]   ;;  %s1171_s4 = inlined_call_operand.vmem [shape: f32[1,128], index: 4, kind: input, shape index: {}]   ;;  %s1172_s5 = inlined_call_operand.hbm [shape: f32[128,128], index: 5, kind: input, shape index: {}]   ;;  %s1173_s6 = inlined_call_operand.vmem [shape: f32[1,128], index: 6, kind: input, shape index: {}]   ;;  %s1174_s7 = inlined_call_operand.hbm [shape: f32[56,128], index: 7, kind: output, shape index: {}]  }
   0x1   :  { %13 = vsyncpa [#allocation6], 0 }
   0x2   :  { %14 = vsyncpa [#allocation9], 0 }
   0x3   :  { %15 = vsyncpa [#allocation4], 0  ;;  %s945_s24 = smov [#allocation5]   ;;  %s946_s26 = smov [#allocation2]  }
   0x4   :  { %s33_s25 = sshll.u32 %s945_s24, 4  ;;  %s21_s27 = sshll.u32 %s946_s26, 4  ;;  %s34_s25 = int_to_ptr.vmem [resolvable:$true] %s33_s25  ;;  %s995_s27 = int_to_ptr.vmem [resolvable:$true] %s21_s27 }
   0x5   :  { %s827_s30 = scalar_lea.hbm %s1168_s1, 2048 }
   0x6   :  { %p828_p0 = scmp.ne.s32.totalorder %s1168_s1, %s827_s30  ;;  %p831_p1 = scmp.lt.u32.totalorder %s827_s30, %s1168_s1 }
   0x8   :  { %p833_p2 = pnand %p831_p1, %p828_p0 }
   0xa   :  { %836 = shalt.err (!%p833_p2)
}
   0xb   :  { %s837_s12 = scalar_lea.vmem %s34_s25, 2048  ;;  %p842_p4 = scmp.lt.s32.totalorder %s34_s25, %s34_s25 }
   0xc   :  { %p838_p3 = scmp.ne.s32.totalorder %s34_s25, %s837_s12  ;;  %p843_p5 = scmp.lt.s32.totalorder %s837_s12, %s837_s12 }
   0xe   :  { %p844_p6 = por %p843_p5, %p842_p4 }
  0x10   :  { %p845_p7 = pnand %p844_p6, %p838_p3 }
  0x12   :  { %848 = shalt.err (!%p845_p7)
}
  0x13   :  { %s947_s13 = smov 128   ;;  %s948_s14 = smov 8  }
  0x14   :  { %39 = dma.hbm_to_vmem [thread:$0]  %s1168_s1, 2048, %s34_s25, [#allocation6], %s947_s13, %s947_s13, %s948_s14  }
  0x15   :  { %s849_s19 = scalar_lea.hbm %s1167_s0, 896 }
  0x16   :  { %p850_p8 = scmp.ne.s32.totalorder %s1167_s0, %s849_s19  ;;  %p853_p9 = scmp.lt.u32.totalorder %s849_s19, %s1167_s0 }
  0x18   :  { %p855_p10 = pnand %p853_p9, %p850_p8 }
  0x1a   :  { %858 = shalt.err (!%p855_p10)
}
  0x1b   :  { %s859_s24 = scalar_lea.vmem %s995_s27, 896  ;;  %p864_p12 = scmp.lt.s32.totalorder %s995_s27, %s995_s27 }
  0x1c   :  { %p860_p11 = scmp.ne.s32.totalorder %s995_s27, %s859_s24  ;;  %p865_p13 = scmp.lt.s32.totalorder %s859_s24, %s859_s24 }
  0x1e   :  { %p866_p0 = por %p865_p13, %p864_p12 }
  0x20   :  { %p867_p1 = pnand %p866_p0, %p860_p11 }
  0x22   :  { %870 = shalt.err (!%p867_p1)
}
  0x23   :  { %27 = dma.hbm_to_vmem [thread:$0]  %s1167_s0, 896, %s995_s27, [#allocation3], %s947_s13, %s947_s13, %s948_s14  }
  0x24   :  { %s949_s26 = smov [#allocation7]   ;;  %s950_s29 = smov [#allocation8]  }
  0x25   :  { %s47_s28 = sshll.u32 %s949_s26, 4  ;;  %s61_s30 = sshll.u32 %s950_s29, 4  ;;  %s48_s28 = int_to_ptr.vmem [resolvable:$true] %s47_s28  ;;  %s1032_s30 = int_to_ptr.vmem [resolvable:$true] %s61_s30 }
  0x26   :  { %s871_s10 = scalar_lea.hbm %s1170_s3, 2048 }
  0x27   :  { %p872_p2 = scmp.ne.s32.totalorder %s1170_s3, %s871_s10  ;;  %p875_p3 = scmp.lt.u32.totalorder %s871_s10, %s1170_s3 }
  0x29   :  { %p877_p4 = pnand %p875_p3, %p872_p2 }
  0x2b   :  { %880 = shalt.err (!%p877_p4)
}
  0x2c   :  { %s881_s0 = scalar_lea.vmem %s48_s28, 2048  ;;  %p886_p6 = scmp.lt.s32.totalorder %s48_s28, %s48_s28 }
  0x2d   :  { %p882_p5 = scmp.ne.s32.totalorder %s48_s28, %s881_s0  ;;  %p887_p7 = scmp.lt.s32.totalorder %s881_s0, %s881_s0 }
  0x2f   :  { %p888_p8 = por %p887_p7, %p886_p6 }
  0x31   :  { %p889_p9 = pnand %p888_p8, %p882_p5 }
  0x33   :  { %892 = shalt.err (!%p889_p9)
}
  0x34   :  { %53 = dma.hbm_to_vmem [thread:$0]  %s1170_s3, 2048, %s48_s28, [#allocation6], %s947_s13, %s947_s13, %s948_s14  }
  0x35   :  { %s893_s20 = scalar_lea.hbm %s1172_s5, 2048 }
  0x36   :  { %p894_p10 = scmp.ne.s32.totalorder %s1172_s5, %s893_s20  ;;  %p897_p11 = scmp.lt.u32.totalorder %s893_s20, %s1172_s5 }
  0x38   :  { %p899_p12 = pnand %p897_p11, %p894_p10 }
  0x3a   :  { %902 = shalt.err (!%p899_p12)
}
  0x3b   :  { %s903_s1 = scalar_lea.vmem %s1032_s30, 2048  ;;  %p908_p0 = scmp.lt.s32.totalorder %s1032_s30, %s1032_s30 }
  0x3c   :  { %p904_p13 = scmp.ne.s32.totalorder %s1032_s30, %s903_s1  ;;  %p909_p1 = scmp.lt.s32.totalorder %s903_s1, %s903_s1 }
  0x3e   :  { %p910_p2 = por %p909_p1, %p908_p0 }
  0x40   :  { %p911_p3 = pnand %p910_p2, %p904_p13 }
  0x42   :  { %914 = shalt.err (!%p911_p3)
}
  0x43   :  { %67 = dma.hbm_to_vmem [thread:$0]  %s1172_s5, 2048, %s1032_s30, [#allocation9], %s947_s13, %s947_s13, %s948_s14  }
  0x44   :  { %937 = dma.done.wait [#allocation3], 896  }
  0x45   :  { %938 = vsyncadd [#allocation3], 4294966400 }
  0x46   :  { %939 = dma.done.wait [#allocation6], 4096  }
  0x47   :  { %940 = vsyncadd [#allocation6], 4294963200 }
  0x48   :  { %941 = dma.done.wait [#allocation9], 2048  }
  0x49   :  { %942 = vsyncadd [#allocation9], 4294965248  ;;  %v951_v0 = vmov 0.0|0.0   ;;  %vm952_vm0 = vmmov 0   ;;  %v953_v1 = vmov 0.0   ;;  %v89_v2 = vld [vmem:[#allocation5] sm:$0xff] }
  0x4a   :  { %729 = vmatprep.subr.bf16.mxu0 %v951_v0  ;;  %602 = vmatprep.mubr.msk.f32.mxu0 %vm952_vm0, %v953_v1  ;;  %v90_v3 = vld [vmem:[#allocation5 + $0x8] sm:$0xff]  ;;  %v91_v4 = vld [vmem:[#allocation5 + $0x10] sm:$0xff]  ;;  %v92_v6 = vld [vmem:[#allocation5 + $0x18] sm:$0xff] }
  0x4b   :  { %753 = vmatprep.subr.bf16.mxu1 %v951_v0  ;;  %655 = vmatprep.mubr.msk.f32.mxu1 %vm952_vm0, %v953_v1  ;;  %v730_v5 = vpack.c.bf16 %v90_v3, %v89_v2  ;;  %v733_v7 = vpack.c.bf16 %v92_v6, %v91_v4  ;;  %v93_v8 = vld [vmem:[#allocation5 + $0x20] sm:$0xff]  ;;  %v94_v9 = vld [vmem:[#allocation5 + $0x28] sm:$0xff]  ;;  %v95_v11 = vld [vmem:[#allocation5 + $0x30] sm:$0xff] }
  0x4c   :  { %v736_v10 = vpack.c.bf16 %v94_v9, %v93_v8  ;;  %v96_v12 = vld [vmem:[#allocation5 + $0x38] sm:$0xff]  ;;  %v219_v13 = vld [vmem:[#allocation7] sm:$0xff]  ;;  %v220_v14 = vld [vmem:[#allocation7 + $0x8] sm:$0xff] }
  0x4d   :  { %731 = vmatpush3.bf16.msra.mxu0 %v730_v5  ;;  %v221_v15 = vld [vmem:[#allocation7 + $0x10] sm:$0xff]  ;;  %v222_v16 = vld [vmem:[#allocation7 + $0x18] sm:$0xff]  ;;  %v754_v17 = vpack.c.bf16 %v220_v14, %v219_v13  ;;  %v739_v18 = vpack.c.bf16 %v96_v12, %v95_v11  ;;  %v97_v19 = vld [vmem:[#allocation5 + $0x40] sm:$0xff] }
  0x4e   :  { %732 = vmatprep.subr.bf16.mxu0 %v951_v0  ;;  %v757_v20 = vpack.c.bf16 %v222_v16, %v221_v15  ;;  %v98_v21 = vld [vmem:[#allocation5 + $0x48] sm:$0xff]  ;;  %v223_v22 = vld [vmem:[#allocation7 + $0x20] sm:$0xff]  ;;  %v99_v25 = vld [vmem:[#allocation5 + $0x50] sm:$0xff] }
  0x4f   :  { %755 = vmatpush3.bf16.msra.mxu1 %v754_v17  ;;  %v224_v23 = vld [vmem:[#allocation7 + $0x28] sm:$0xff]  ;;  %v742_v24 = vpack.c.bf16 %v98_v21, %v97_v19  ;;  %v100_v27 = vld [vmem:[#allocation5 + $0x58] sm:$0xff]  ;;  %v225_v28 = vld [vmem:[#allocation7 + $0x30] sm:$0xff] }
  0x50   :  { %756 = vmatprep.subr.bf16.mxu1 %v951_v0  ;;  %v760_v26 = vpack.c.bf16 %v224_v23, %v223_v22  ;;  %v226_v29 = vld [vmem:[#allocation7 + $0x38] sm:$0xff]  ;;  %v745_v30 = vpack.c.bf16 %v100_v27, %v99_v25  ;;  %v101_v31 = vld [vmem:[#allocation5 + $0x60] sm:$0xff]  ;;  %v102_v33 = vld [vmem:[#allocation5 + $0x68] sm:$0xff] }
  0x51   :  { %734 = vmatpush3.bf16.msra.mxu0 %v733_v7  ;;  %v763_v32 = vpack.c.bf16 %v226_v29, %v225_v28  ;;  %v227_v34 = vld [vmem:[#allocation7 + $0x40] sm:$0xff]  ;;  %v228_v35 = vld [vmem:[#allocation7 + $0x48] sm:$0xff]  ;;  %v748_v36 = vpack.c.bf16 %v102_v33, %v101_v31  ;;  %v103_v37 = vld [vmem:[#allocation5 + $0x70] sm:$0xff] }
  0x52   :  { %735 = vmatprep.subr.bf16.mxu0 %v951_v0  ;;  %v766_v38 = vpack.c.bf16 %v228_v35, %v227_v34  ;;  %v104_v39 = vld [vmem:[#allocation5 + $0x78] sm:$0xff]  ;;  %v229_v40 = vld [vmem:[#allocation7 + $0x50] sm:$0xff]  ;;  %v231_v44 = vld [vmem:[#allocation7 + $0x60] sm:$0xff] }
  0x53   :  { %758 = vmatpush3.bf16.msra.mxu1 %v757_v20  ;;  %v230_v41 = vld [vmem:[#allocation7 + $0x58] sm:$0xff]  ;;  %v751_v42 = vpack.c.bf16 %v104_v39, %v103_v37  ;;  %v232_v45 = vld [vmem:[#allocation7 + $0x68] sm:$0xff]  ;;  %v83_v48 = vld [vmem:[#allocation2 + $0x8] sm:$0xff] }
  0x54   :  { %759 = vmatprep.subr.bf16.mxu1 %v951_v0  ;;  %v769_v43 = vpack.c.bf16 %v230_v41, %v229_v40  ;;  %v82_v46 = vld [vmem:[#allocation2] sm:$0xff]  ;;  %v772_v47 = vpack.c.bf16 %v232_v45, %v231_v44  ;;  %v84_v49 = vld [vmem:[#allocation2 + $0x10] sm:$0xff]  ;;  %v85_v50 = vld [vmem:[#allocation2 + $0x18] sm:$0xff] }
  0x55   :  { %737 = vmatpush3.bf16.msra.mxu0 %v736_v10  ;;  %v86_v51 = vld [vmem:[#allocation2 + $0x20] sm:$0xff]  ;;  %v87_v52 = vld [vmem:[#allocation2 + $0x28] sm:$0xff]  ;;  %v88_v53 = vld [vmem:[#allocation2 + $0x30] sm:$0xff] }
  0x56   :  { %738 = vmatprep.subr.bf16.mxu0 %v951_v0  ;;  %v233_v54 = vld [vmem:[#allocation7 + $0x70] sm:$0xff]  ;;  %v234_v55 = vld [vmem:[#allocation7 + $0x78] sm:$0xff]  ;;  %v349_v57 = vld [vmem:[#allocation8] sm:$0xff] }
  0x57   :  { %761 = vmatpush3.bf16.msra.mxu1 %v760_v26  ;;  %v775_v56 = vpack.c.bf16 %v234_v55, %v233_v54  ;;  %v350_v58 = vld [vmem:[#allocation8 + $0x8] sm:$0xff]  ;;  %v351_v59 = vld [vmem:[#allocation8 + $0x10] sm:$0xff]  ;;  %v352_v61 = vld [vmem:[#allocation8 + $0x18] sm:$0xff] }
  0x58   :  { %762 = vmatprep.subr.bf16.mxu1 %v951_v0  ;;  %v778_v60 = vpack.c.bf16 %v350_v58, %v349_v57  ;;  %v781_v62 = vpack.c.bf16 %v352_v61, %v351_v59  ;;  %v353_v63 = vld [vmem:[#allocation8 + $0x20] sm:$0xff]  ;;  %v354_v2 = vld [vmem:[#allocation8 + $0x28] sm:$0xff]  ;;  %v355_v4 = vld [vmem:[#allocation8 + $0x30] sm:$0xff] }
  0x59   :  { %740 = vmatpush3.bf16.msra.mxu0 %v739_v18  ;;  %v784_v3 = vpack.c.bf16 %v354_v2, %v353_v63  ;;  %v356_v5 = vld [vmem:[#allocation8 + $0x38] sm:$0xff]  ;;  %v357_v7 = vld [vmem:[#allocation8 + $0x40] sm:$0xff]  ;;  %v358_v8 = vld [vmem:[#allocation8 + $0x48] sm:$0xff] }
  0x5a   :  { %741 = vmatprep.subr.bf16.mxu0 %v951_v0  ;;  %v787_v6 = vpack.c.bf16 %v356_v5, %v355_v4  ;;  %v790_v9 = vpack.c.bf16 %v358_v8, %v357_v7  ;;  %v359_v10 = vld [vmem:[#allocation8 + $0x50] sm:$0xff]  ;;  %v360_v11 = vld [vmem:[#allocation8 + $0x58] sm:$0xff]  ;;  %v361_v13 = vld [vmem:[#allocation8 + $0x60] sm:$0xff] }
  0x5b   :  { %764 = vmatpush3.bf16.msra.mxu1 %v763_v32  ;;  %v793_v12 = vpack.c.bf16 %v360_v11, %v359_v10  ;;  %v362_v14 = vld [vmem:[#allocation8 + $0x68] sm:$0xff]  ;;  %v363_v45 = vld [vmem:[#allocation8 + $0x70] sm:$0xff] }
  0x5c   :  { %765 = vmatprep.subr.bf16.mxu1 %v951_v0  ;;  %v796_v15 = vpack.c.bf16 %v362_v14, %v361_v13  ;;  %v498_v16 = vld [vmem:[%s1169_s2] ss:$0 sm:$0xff] }
  0x5d   :  { %743 = vmatpush3.bf16.msra.mxu0 %v742_v24  ;;  %v500_v14 = vld [vmem:[%s1173_s6] ss:$0 sm:$0xff]  ;;  %s954_s6 = smov [#allocation10]  }
  0x5e   :  { %744 = vmatprep.subr.bf16.mxu0 %v951_v0  ;;  %s484_s30 = sshll.u32 %s954_s6, 4  ;;  %s485_s30 = int_to_ptr.vmem [resolvable:$true] %s484_s30 }
  0x5f   :  { %767 = vmatpush3.bf16.msra.mxu1 %v766_v38  ;;  %s915_s8 = scalar_lea.vmem %s485_s30, 896  ;;  %p920_p5 = scmp.lt.s32.totalorder %s485_s30, %s485_s30 }
  0x60   :  { %768 = vmatprep.subr.bf16.mxu1 %v951_v0  ;;  %p916_p4 = scmp.ne.s32.totalorder %s485_s30, %s915_s8  ;;  %p921_p6 = scmp.lt.s32.totalorder %s915_s8, %s915_s8 }
  0x61   :  { %746 = vmatpush3.bf16.msra.mxu0 %v745_v30 }
  0x62   :  { %747 = vmatprep.subr.bf16.mxu0 %v951_v0  ;;  %p922_p7 = por %p921_p6, %p920_p5 }
  0x63   :  { %770 = vmatpush3.bf16.msra.mxu1 %v769_v43 }
  0x64   :  { %771 = vmatprep.subr.bf16.mxu1 %v951_v0  ;;  %p923_p8 = pnand %p922_p7, %p916_p4 }
  0x65   :  { %749 = vmatpush3.bf16.msra.mxu0 %v748_v36 }
  0x66   :  { %750 = vmatprep.subr.bf16.mxu0 %v951_v0 }
  0x67   :  { %773 = vmatpush3.bf16.msra.mxu1 %v772_v47 }
  0x68   :  { %774 = vmatprep.subr.bf16.mxu1 %v951_v0 }
  0x69   :  { %752 = vmatpush3.bf16.msra.mxu0 %v751_v42 }
  0x6a   :  { %777 = vmatprep.subr.bf16.mxu0 %v951_v0 }
  0x6b   :  { %776 = vmatpush3.bf16.msra.mxu1 %v775_v56 }
  0x6c   :  { %603 = vmatmul.mubr.f32.vlgmr.msra.gmra.mrb[0].mxu0 %v82_v46  ;;  %801 = vmatprep.subr.bf16.mxu1 %v951_v0  ;;  %v364_v46 = vld [vmem:[#allocation8 + $0x78] sm:$0xff] }
  0x6d   :  { %605 = vmatprep.mubr.msk.f32.mxu0 %vm952_vm0, %v953_v1  ;;  %779 = vmatpush3.bf16.msra.mxu0 %v778_v60  ;;  %v799_v47 = vpack.c.bf16 %v364_v46, %v363_v45 }
  0x6e   :  { %780 = vmatprep.subr.bf16.mxu0 %v951_v0 }
  0x70   :  { %606 = vmatmul.mubr.f32.gmra.mrb[2].mxu0 %v83_v48  ;;  %v499_v48 = vld [vmem:[%s1171_s4] ss:$0 sm:$0xff] }
  0x71   :  { %608 = vmatprep.mubr.msk.f32.mxu0 %vm952_vm0, %v953_v1  ;;  %782 = vmatpush3.bf16.msra.mxu0 %v781_v62 }
  0x72   :  { %783 = vmatprep.subr.bf16.mxu0 %v951_v0 }
  0x74   :  { %609 = vmatmul.mubr.f32.gmra.mrb[4].mxu0 %v84_v49 }
  0x75   :  { %611 = vmatprep.mubr.msk.f32.mxu0 %vm952_vm0, %v953_v1  ;;  %785 = vmatpush3.bf16.msra.mxu0 %v784_v3 }
  0x76   :  { %786 = vmatprep.subr.bf16.mxu0 %v951_v0 }
  0x78   :  { %612 = vmatmul.mubr.f32.gmra.mrb[6].mxu0 %v85_v50 }
  0x79   :  { %614 = vmatprep.mubr.msk.f32.mxu0 %vm952_vm0, %v953_v1  ;;  %788 = vmatpush3.bf16.msra.mxu0 %v787_v6 }
  0x7a   :  { %789 = vmatprep.subr.bf16.mxu0 %v951_v0 }
  0x7c   :  { %615 = vmatmul.mubr.f32.gmra.mrb[8].mxu0 %v86_v51 }
  0x7d   :  { %617 = vmatprep.mubr.msk.f32.mxu0 %vm952_vm0, %v953_v1  ;;  %791 = vmatpush3.bf16.msra.mxu0 %v790_v9 }
  0x7e   :  { %792 = vmatprep.subr.bf16.mxu0 %v951_v0 }
  0x80   :  { %618 = vmatmul.mubr.f32.gmra.mrb[10].mxu0 %v87_v52 }
  0x81   :  { %620 = vmatprep.mubr.msk.f32.mxu0 %vm952_vm0, %v953_v1  ;;  %794 = vmatpush3.bf16.msra.mxu0 %v793_v12 }
  0x82   :  { %795 = vmatprep.subr.bf16.mxu0 %v951_v0 }
  0x84   :  { %621 = vmatmul.mubr.f32.gmra.mrb[12].mxu0 %v88_v53 }
  0x85   :  { %708 = vmatprep.mubr.msk.f32.mxu0 %vm952_vm0, %v953_v1  ;;  %797 = vmatpush3.bf16.msra.mxu0 %v796_v15 }
  0x86   :  { %798 = vmatprep.subr.bf16.mxu0 %v951_v0 }
  0x89   :  { %800 = vmatpush3.bf16.msra.mxu0 %v799_v47 }
 0x13f   :  { %v178_v17 = vpop.f32.mrb[0].mxu0 }
 0x140   :  { %v179_v18 = vadd.f32 %v498_v16, %v178_v17  ;;  %v604_v19 = vpop.f32.mrb[1].mxu0 }
 0x142   :  { %v212_v20 = vmax.f32 %v179_v18, 0.0 }
 0x143   :  { %v183_v21 = vpop.f32.mrb[2].mxu0 }
 0x144   :  { %v184_v22 = vadd.f32 %v498_v16, %v183_v21  ;;  %v607_v23 = vpop.f32.mrb[3].mxu0  ;;  %656 = vmatmul.mubr.f32.vlgmr.msra.gmra.mrb[0].mxu1 %v212_v20 }
 0x145   :  { %658 = vmatprep.mubr.msk.f32.mxu1 %vm952_vm0, %v953_v1  ;;  %809 = vmatpush3.bf16.msra.mxu1 %v778_v60 }
 0x146   :  { %v213_v24 = vmax.f32 %v184_v22, 0.0  ;;  %802 = vmatprep.subr.bf16.mxu1 %v951_v0 }
 0x147   :  { %v188_v25 = vpop.f32.mrb[4].mxu0 }
 0x148   :  { %v189_v26 = vadd.f32 %v498_v16, %v188_v25  ;;  %v610_v27 = vpop.f32.mrb[5].mxu0  ;;  %659 = vmatmul.mubr.f32.gmra.mrb[2].mxu1 %v213_v24 }
 0x149   :  { %661 = vmatprep.mubr.msk.f32.mxu1 %vm952_vm0, %v953_v1  ;;  %810 = vmatpush3.bf16.msra.mxu1 %v781_v62 }
 0x14a   :  { %v214_v28 = vmax.f32 %v189_v26, 0.0  ;;  %803 = vmatprep.subr.bf16.mxu1 %v951_v0 }
 0x14b   :  { %v193_v29 = vpop.f32.mrb[6].mxu0 }
 0x14c   :  { %v194_v30 = vadd.f32 %v498_v16, %v193_v29  ;;  %v613_v31 = vpop.f32.mrb[7].mxu0  ;;  %662 = vmatmul.mubr.f32.gmra.mrb[4].mxu1 %v214_v28 }
 0x14d   :  { %664 = vmatprep.mubr.msk.f32.mxu1 %vm952_vm0, %v953_v1  ;;  %811 = vmatpush3.bf16.msra.mxu1 %v784_v3 }
 0x14e   :  { %v215_v32 = vmax.f32 %v194_v30, 0.0  ;;  %804 = vmatprep.subr.bf16.mxu1 %v951_v0 }
 0x14f   :  { %v198_v33 = vpop.f32.mrb[8].mxu0 }
 0x150   :  { %v199_v34 = vadd.f32 %v498_v16, %v198_v33  ;;  %v616_v35 = vpop.f32.mrb[9].mxu0  ;;  %665 = vmatmul.mubr.f32.gmra.mrb[6].mxu1 %v215_v32 }
 0x151   :  { %667 = vmatprep.mubr.msk.f32.mxu1 %vm952_vm0, %v953_v1  ;;  %812 = vmatpush3.bf16.msra.mxu1 %v787_v6 }
 0x152   :  { %v216_v36 = vmax.f32 %v199_v34, 0.0  ;;  %805 = vmatprep.subr.bf16.mxu1 %v951_v0 }
 0x153   :  { %v203_v37 = vpop.f32.mrb[10].mxu0 }
 0x154   :  { %v204_v38 = vadd.f32 %v498_v16, %v203_v37  ;;  %v619_v39 = vpop.f32.mrb[11].mxu0  ;;  %668 = vmatmul.mubr.f32.gmra.mrb[8].mxu1 %v216_v36 }
 0x155   :  { %670 = vmatprep.mubr.msk.f32.mxu1 %vm952_vm0, %v953_v1  ;;  %813 = vmatpush3.bf16.msra.mxu1 %v790_v9 }
 0x156   :  { %v217_v40 = vmax.f32 %v204_v38, 0.0  ;;  %806 = vmatprep.subr.bf16.mxu1 %v951_v0 }
 0x157   :  { %v208_v41 = vpop.f32.mrb[12].mxu0 }
 0x158   :  { %v209_v42 = vadd.f32 %v498_v16, %v208_v41  ;;  %v622_v43 = vpop.f32.mrb[13].mxu0  ;;  %671 = vmatmul.mubr.f32.gmra.mrb[10].mxu1 %v217_v40 }
 0x159   :  { %673 = vmatprep.mubr.msk.f32.mxu1 %vm952_vm0, %v953_v1  ;;  %814 = vmatpush3.bf16.msra.mxu1 %v793_v12 }
 0x15a   :  { %v218_v44 = vmax.f32 %v209_v42, 0.0  ;;  %807 = vmatprep.subr.bf16.mxu1 %v951_v0 }
 0x15c   :  { %674 = vmatmul.mubr.f32.gmra.mrb[12].mxu1 %v218_v44 }
 0x15d   :  { %815 = vmatpush3.bf16.msra.mxu1 %v796_v15  ;;  %720 = vmatprep.mubr.msk.f32.mxu1 %vm952_vm0, %v953_v1 }
 0x15e   :  { %808 = vmatprep.subr.bf16.mxu1 %v951_v0 }
 0x161   :  { %816 = vmatpush3.bf16.msra.mxu1 %v799_v47 }
 0x217   :  { %v308_v49 = vpop.f32.mrb[0].mxu1 }
 0x218   :  { %v309_v50 = vadd.f32 %v499_v48, %v308_v49  ;;  %v657_v51 = vpop.f32.mrb[1].mxu1 }
 0x21a   :  { %v342_v52 = vmax.f32 %v309_v50, 0.0 }
 0x21b   :  { %v313_v53 = vpop.f32.mrb[2].mxu1 }
 0x21c   :  { %v314_v54 = vadd.f32 %v499_v48, %v313_v53  ;;  %v660_v55 = vpop.f32.mrb[3].mxu1  ;;  %709 = vmatmul.mubr.f32.vlgmr.msra.gmra.mrb[14].mxu0 %v342_v52 }
 0x21d   :  { %711 = vmatprep.mubr.msk.f32.mxu0 %vm952_vm0, %v953_v1 }
 0x21e   :  { %v343_v0 = vmax.f32 %v314_v54, 0.0 }
 0x21f   :  { %v318_v56 = vpop.f32.mrb[4].mxu1 }
 0x220   :  { %v319_v57 = vadd.f32 %v499_v48, %v318_v56  ;;  %v663_v58 = vpop.f32.mrb[5].mxu1  ;;  %712 = vmatmul.mubr.f32.gmra.mrb[16].mxu0 %v343_v0 }
 0x221   :  { %714 = vmatprep.mubr.msk.f32.mxu0 %vm952_vm0, %v953_v1 }
 0x222   :  { %v344_v59 = vmax.f32 %v319_v57, 0.0 }
 0x223   :  { %v323_v60 = vpop.f32.mrb[6].mxu1 }
 0x224   :  { %v324_v61 = vadd.f32 %v499_v48, %v323_v60  ;;  %v666_v62 = vpop.f32.mrb[7].mxu1  ;;  %715 = vmatmul.mubr.f32.gmra.mrb[18].mxu0 %v344_v59 }
 0x225   :  { %717 = vmatprep.mubr.msk.f32.mxu0 %vm952_vm0, %v953_v1 }
 0x226   :  { %v345_v63 = vmax.f32 %v324_v61, 0.0 }
 0x227   :  { %v328_v2 = vpop.f32.mrb[8].mxu1 }
 0x228   :  { %v329_v3 = vadd.f32 %v499_v48, %v328_v2  ;;  %v669_v4 = vpop.f32.mrb[9].mxu1  ;;  %718 = vmatmul.mubr.f32.gmra.mrb[20].mxu0 %v345_v63 }
 0x22a   :  { %v346_v5 = vmax.f32 %v329_v3, 0.0 }
 0x22b   :  { %v333_v6 = vpop.f32.mrb[10].mxu1 }
 0x22c   :  { %v334_v7 = vadd.f32 %v499_v48, %v333_v6  ;;  %v672_v8 = vpop.f32.mrb[11].mxu1  ;;  %721 = vmatmul.mubr.f32.vlgmr.msra.gmra.mrb[14].mxu1 %v346_v5 }
 0x22d   :  { %723 = vmatprep.mubr.msk.f32.mxu1 %vm952_vm0, %v953_v1 }
 0x22e   :  { %v347_v9 = vmax.f32 %v334_v7, 0.0 }
 0x22f   :  { %v338_v10 = vpop.f32.mrb[12].mxu1 }
 0x230   :  { %v339_v11 = vadd.f32 %v499_v48, %v338_v10  ;;  %v675_v12 = vpop.f32.mrb[13].mxu1  ;;  %724 = vmatmul.mubr.f32.gmra.mrb[16].mxu1 %v347_v9 }
 0x231   :  { %726 = vmatprep.mubr.msk.f32.mxu1 %vm952_vm0, %v953_v1 }
 0x232   :  { %v348_v13 = vmax.f32 %v339_v11, 0.0 }
 0x234   :  { %727 = vmatmul.mubr.f32.gmra.mrb[18].mxu1 %v348_v13 }
 0x2ef   :  { %v438_v15 = vpop.f32.mrb[14].mxu0 }
 0x2f0   :  { %v439_v16 = vadd.f32 %v500_v14, %v438_v15  ;;  %v710_v17 = vpop.f32.mrb[15].mxu0 }
 0x2f2   :  { %472 = vst [vmem:[#allocation10] sm:$0xff] %v439_v16 }
 0x2f3   :  { %v443_v18 = vpop.f32.mrb[16].mxu0 }
 0x2f4   :  { %v444_v19 = vadd.f32 %v500_v14, %v443_v18  ;;  %v713_v20 = vpop.f32.mrb[17].mxu0 }
 0x2f6   :  { %473 = vst [vmem:[#allocation10 + $0x8] sm:$0xff] %v444_v19 }
 0x2f7   :  { %v448_v21 = vpop.f32.mrb[18].mxu0 }
 0x2f8   :  { %v449_v22 = vadd.f32 %v500_v14, %v448_v21  ;;  %v716_v23 = vpop.f32.mrb[19].mxu0 }
 0x2fa   :  { %474 = vst [vmem:[#allocation10 + $0x10] sm:$0xff] %v449_v22 }
 0x2fb   :  { %v453_v24 = vpop.f32.mrb[20].mxu0 }
 0x2fc   :  { %v454_v1 = vadd.f32 %v500_v14, %v453_v24  ;;  %v719_v25 = vpop.f32.mrb[21].mxu0 }
 0x2fe   :  { %475 = vst [vmem:[#allocation10 + $0x18] sm:$0xff] %v454_v1 }
 0x2ff   :  { %v458_v26 = vpop.f32.mrb[14].mxu1 }
 0x300   :  { %v459_v27 = vadd.f32 %v500_v14, %v458_v26  ;;  %v722_v28 = vpop.f32.mrb[15].mxu1 }
 0x302   :  { %476 = vst [vmem:[#allocation10 + $0x20] sm:$0xff] %v459_v27 }
 0x303   :  { %v463_v29 = vpop.f32.mrb[16].mxu1 }
 0x304   :  { %v464_v30 = vadd.f32 %v500_v14, %v463_v29  ;;  %v725_v31 = vpop.f32.mrb[17].mxu1 }
 0x306   :  { %477 = vst [vmem:[#allocation10 + $0x28] sm:$0xff] %v464_v30 }
 0x307   :  { %v468_v32 = vpop.f32.mrb[18].mxu1 }
 0x308   :  { %v469_v33 = vadd.f32 %v500_v14, %v468_v32  ;;  %v728_v34 = vpop.f32.mrb[19].mxu1 }
 0x30a   :  { %478 = vst [vmem:[#allocation10 + $0x30] sm:$0xff] %v469_v33 }
 0x30b   :  { %926 = shalt.err (!%p923_p8)
}
 0x30c   :  { %s927_s11 = scalar_lea.hbm %s1174_s7, 896 }
 0x30d   :  { %p928_p9 = scmp.ne.s32.totalorder %s1174_s7, %s927_s11  ;;  %p931_p10 = scmp.lt.u32.totalorder %s927_s11, %s1174_s7 }
 0x30f   :  { %p933_p11 = pnand %p931_p10, %p928_p9 }
 0x311   :  { %936 = shalt.err (!%p933_p11)
}
 0x312   :  { %490 = dma.vmem_to_hbm [thread:$0]  %s485_s30, 896, %s1174_s7, [#allocation4], %s947_s13, %s947_s13, %s948_s14  }
 0x313   :  { %943 = dma.done.wait [#allocation4], 896  }
 0x314   :  { %944 = vsyncadd [#allocation4], 4294966400 }
 0x315   :  { %494 = vsyncpa [#allocation3], 1 }
 0x316   :  { %495 = vsyncpa [#allocation6], 1 }
 0x317   :  { %496 = vsyncpa [#allocation9], 1 }
 0x318   :  { %497 = vsyncpa [#allocation4], 1 }

// kernel: tpu_custom_call.1
= control target key start
LH: loop header
LB: loop body
LE: loop exit
PB: predicated region body
PF: predicated region fallthrough
CT: control target
= control target key end

     0   :  { %12 = vsyncpa [#allocation3], 0  ;;  %s1167_s0 = inlined_call_operand.hbm [shape: f32[56,128], index: 0, kind: input, shape index: {}]   ;;  %s1168_s1 = inlined_call_operand.hbm [shape: f32[128,128], index: 1, kind: input, shape index: {}]   ;;  %s1169_s2 = inlined_call_operand.vmem [shape: f32[1,128], index: 2, kind: input, shape index: {}]   ;;  %s1170_s3 = inlined_call_operand.hbm [shape: f32[128,128], index: 3, kind: input, shape index: {}]   ;;  %s1171_s4 = inlined_call_operand.vmem [shape: f32[1,128], index: 4, kind: input, shape index: {}]   ;;  %s1172_s5 = inlined_call_operand.hbm [shape: f32[128,128], index: 5, kind: input, shape index: {}]   ;;  %s1173_s6 = inlined_call_operand.vmem [shape: f32[1,128], index: 6, kind: input, shape index: {}]   ;;  %s1174_s7 = inlined_call_operand.hbm [shape: f32[56,128], index: 7, kind: output, shape index: {}]  }
   0x1   :  { %13 = vsyncpa [#allocation6], 0 }
   0x2   :  { %14 = vsyncpa [#allocation9], 0 }
   0x3   :  { %15 = vsyncpa [#allocation4], 0  ;;  %s945_s24 = smov [#allocation5]   ;;  %s946_s26 = smov [#allocation2]  }
   0x4   :  { %s33_s25 = sshll.u32 %s945_s24, 4  ;;  %s21_s27 = sshll.u32 %s946_s26, 4  ;;  %s34_s25 = int_to_ptr.vmem [resolvable:$true] %s33_s25  ;;  %s995_s27 = int_to_ptr.vmem [resolvable:$true] %s21_s27 }
   0x5   :  { %s827_s30 = scalar_lea.hbm %s1168_s1, 2048 }
   0x6   :  { %p828_p0 = scmp.ne.s32.totalorder %s1168_s1, %s827_s30  ;;  %p831_p1 = scmp.lt.u32.totalorder %s827_s30, %s1168_s1 }
   0x8   :  { %p833_p2 = pnand %p831_p1, %p828_p0 }
   0xa   :  { %836 = shalt.err (!%p833_p2)
}
   0xb   :  { %s837_s12 = scalar_lea.vmem %s34_s25, 2048  ;;  %p842_p4 = scmp.lt.s32.totalorder %s34_s25, %s34_s25 }
   0xc   :  { %p838_p3 = scmp.ne.s32.totalorder %s34_s25, %s837_s12  ;;  %p843_p5 = scmp.lt.s32.totalorder %s837_s12, %s837_s12 }
   0xe   :  { %p844_p6 = por %p843_p5, %p842_p4 }
  0x10   :  { %p845_p7 = pnand %p844_p6, %p838_p3 }
  0x12   :  { %848 = shalt.err (!%p845_p7)
}
  0x13   :  { %s947_s13 = smov 128   ;;  %s948_s14 = smov 8  }
  0x14   :  { %39 = dma.hbm_to_vmem [thread:$0]  %s1168_s1, 2048, %s34_s25, [#allocation6], %s947_s13, %s947_s13, %s948_s14  }
  0x15   :  { %s849_s19 = scalar_lea.hbm %s1167_s0, 896 }
  0x16   :  { %p850_p8 = scmp.ne.s32.totalorder %s1167_s0, %s849_s19  ;;  %p853_p9 = scmp.lt.u32.totalorder %s849_s19, %s1167_s0 }
  0x18   :  { %p855_p10 = pnand %p853_p9, %p850_p8 }
  0x1a   :  { %858 = shalt.err (!%p855_p10)
}
  0x1b   :  { %s859_s24 = scalar_lea.vmem %s995_s27, 896  ;;  %p864_p12 = scmp.lt.s32.totalorder %s995_s27, %s995_s27 }
  0x1c   :  { %p860_p11 = scmp.ne.s32.totalorder %s995_s27, %s859_s24  ;;  %p865_p13 = scmp.lt.s32.totalorder %s859_s24, %s859_s24 }
  0x1e   :  { %p866_p0 = por %p865_p13, %p864_p12 }
  0x20   :  { %p867_p1 = pnand %p866_p0, %p860_p11 }
  0x22   :  { %870 = shalt.err (!%p867_p1)
}
  0x23   :  { %27 = dma.hbm_to_vmem [thread:$0]  %s1167_s0, 896, %s995_s27, [#allocation3], %s947_s13, %s947_s13, %s948_s14  }
  0x24   :  { %s949_s26 = smov [#allocation7]   ;;  %s950_s29 = smov [#allocation8]  }
  0x25   :  { %s47_s28 = sshll.u32 %s949_s26, 4  ;;  %s61_s30 = sshll.u32 %s950_s29, 4  ;;  %s48_s28 = int_to_ptr.vmem [resolvable:$true] %s47_s28  ;;  %s1032_s30 = int_to_ptr.vmem [resolvable:$true] %s61_s30 }
  0x26   :  { %s871_s10 = scalar_lea.hbm %s1170_s3, 2048 }
  0x27   :  { %p872_p2 = scmp.ne.s32.totalorder %s1170_s3, %s871_s10  ;;  %p875_p3 = scmp.lt.u32.totalorder %s871_s10, %s1170_s3 }
  0x29   :  { %p877_p4 = pnand %p875_p3, %p872_p2 }
  0x2b   :  { %880 = shalt.err (!%p877_p4)
}
  0x2c   :  { %s881_s0 = scalar_lea.vmem %s48_s28, 2048  ;;  %p886_p6 = scmp.lt.s32.totalorder %s48_s28, %s48_s28 }
  0x2d   :  { %p882_p5 = scmp.ne.s32.totalorder %s48_s28, %s881_s0  ;;  %p887_p7 = scmp.lt.s32.totalorder %s881_s0, %s881_s0 }
  0x2f   :  { %p888_p8 = por %p887_p7, %p886_p6 }
  0x31   :  { %p889_p9 = pnand %p888_p8, %p882_p5 }
  0x33   :  { %892 = shalt.err (!%p889_p9)
}
  0x34   :  { %53 = dma.hbm_to_vmem [thread:$0]  %s1170_s3, 2048, %s48_s28, [#allocation6], %s947_s13, %s947_s13, %s948_s14  }
  0x35   :  { %s893_s20 = scalar_lea.hbm %s1172_s5, 2048 }
  0x36   :  { %p894_p10 = scmp.ne.s32.totalorder %s1172_s5, %s893_s20  ;;  %p897_p11 = scmp.lt.u32.totalorder %s893_s20, %s1172_s5 }
  0x38   :  { %p899_p12 = pnand %p897_p11, %p894_p10 }
  0x3a   :  { %902 = shalt.err (!%p899_p12)
}
  0x3b   :  { %s903_s1 = scalar_lea.vmem %s1032_s30, 2048  ;;  %p908_p0 = scmp.lt.s32.totalorder %s1032_s30, %s1032_s30 }
  0x3c   :  { %p904_p13 = scmp.ne.s32.totalorder %s1032_s30, %s903_s1  ;;  %p909_p1 = scmp.lt.s32.totalorder %s903_s1, %s903_s1 }
  0x3e   :  { %p910_p2 = por %p909_p1, %p908_p0 }
  0x40   :  { %p911_p3 = pnand %p910_p2, %p904_p13 }
  0x42   :  { %914 = shalt.err (!%p911_p3)
}
  0x43   :  { %67 = dma.hbm_to_vmem [thread:$0]  %s1172_s5, 2048, %s1032_s30, [#allocation9], %s947_s13, %s947_s13, %s948_s14  }
  0x44   :  { %937 = dma.done.wait [#allocation3], 896  }
  0x45   :  { %938 = vsyncadd [#allocation3], 4294966400 }
  0x46   :  { %939 = dma.done.wait [#allocation6], 4096  }
  0x47   :  { %940 = vsyncadd [#allocation6], 4294963200 }
  0x48   :  { %941 = dma.done.wait [#allocation9], 2048  }
  0x49   :  { %942 = vsyncadd [#allocation9], 4294965248  ;;  %v951_v0 = vmov 0.0|0.0   ;;  %vm952_vm0 = vmmov 0   ;;  %v953_v1 = vmov 0.0   ;;  %v89_v2 = vld [vmem:[#allocation5] sm:$0xff] }
  0x4a   :  { %729 = vmatprep.subr.bf16.mxu0 %v951_v0  ;;  %602 = vmatprep.mubr.msk.f32.mxu0 %vm952_vm0, %v953_v1  ;;  %v90_v3 = vld [vmem:[#allocation5 + $0x8] sm:$0xff]  ;;  %v91_v4 = vld [vmem:[#allocation5 + $0x10] sm:$0xff]  ;;  %v92_v6 = vld [vmem:[#allocation5 + $0x18] sm:$0xff] }
  0x4b   :  { %753 = vmatprep.subr.bf16.mxu1 %v951_v0  ;;  %655 = vmatprep.mubr.msk.f32.mxu1 %vm952_vm0, %v953_v1  ;;  %v730_v5 = vpack.c.bf16 %v90_v3, %v89_v2  ;;  %v733_v7 = vpack.c.bf16 %v92_v6, %v91_v4  ;;  %v93_v8 = vld [vmem:[#allocation5 + $0x20] sm:$0xff]  ;;  %v94_v9 = vld [vmem:[#allocation5 + $0x28] sm:$0xff]  ;;  %v95_v11 = vld [vmem:[#allocation5 + $0x30] sm:$0xff] }
  0x4c   :  { %v736_v10 = vpack.c.bf16 %v94_v9, %v93_v8  ;;  %v96_v12 = vld [vmem:[#allocation5 + $0x38] sm:$0xff]  ;;  %v219_v13 = vld [vmem:[#allocation7] sm:$0xff]  ;;  %v220_v14 = vld [vmem:[#allocation7 + $0x8] sm:$0xff] }
  0x4d   :  { %731 = vmatpush3.bf16.msra.mxu0 %v730_v5  ;;  %v221_v15 = vld [vmem:[#allocation7 + $0x10] sm:$0xff]  ;;  %v222_v16 = vld [vmem:[#allocation7 + $0x18] sm:$0xff]  ;;  %v754_v17 = vpack.c.bf16 %v220_v14, %v219_v13  ;;  %v739_v18 = vpack.c.bf16 %v96_v12, %v95_v11  ;;  %v97_v19 = vld [vmem:[#allocation5 + $0x40] sm:$0xff] }
  0x4e   :  { %732 = vmatprep.subr.bf16.mxu0 %v951_v0  ;;  %v757_v20 = vpack.c.bf16 %v222_v16, %v221_v15  ;;  %v98_v21 = vld [vmem:[#allocation5 + $0x48] sm:$0xff]  ;;  %v223_v22 = vld [vmem:[#allocation7 + $0x20] sm:$0xff]  ;;  %v99_v25 = vld [vmem:[#allocation5 + $0x50] sm:$0xff] }
  0x4f   :  { %755 = vmatpush3.bf16.msra.mxu1 %v754_v17  ;;  %v224_v23 = vld [vmem:[#allocation7 + $0x28] sm:$0xff]  ;;  %v742_v24 = vpack.c.bf16 %v98_v21, %v97_v19  ;;  %v100_v27 = vld [vmem:[#allocation5 + $0x58] sm:$0xff]  ;;  %v225_v28 = vld [vmem:[#allocation7 + $0x30] sm:$0xff] }
  0x50   :  { %756 = vmatprep.subr.bf16.mxu1 %v951_v0  ;;  %v760_v26 = vpack.c.bf16 %v224_v23, %v223_v22  ;;  %v226_v29 = vld [vmem:[#allocation7 + $0x38] sm:$0xff]  ;;  %v745_v30 = vpack.c.bf16 %v100_v27, %v99_v25  ;;  %v101_v31 = vld [vmem:[#allocation5 + $0x60] sm:$0xff]  ;;  %v102_v33 = vld [vmem:[#allocation5 + $0x68] sm:$0xff] }
  0x51   :  { %734 = vmatpush3.bf16.msra.mxu0 %v733_v7  ;;  %v763_v32 = vpack.c.bf16 %v226_v29, %v225_v28  ;;  %v227_v34 = vld [vmem:[#allocation7 + $0x40] sm:$0xff]  ;;  %v228_v35 = vld [vmem:[#allocation7 + $0x48] sm:$0xff]  ;;  %v748_v36 = vpack.c.bf16 %v102_v33, %v101_v31  ;;  %v103_v37 = vld [vmem:[#allocation5 + $0x70] sm:$0xff] }
  0x52   :  { %735 = vmatprep.subr.bf16.mxu0 %v951_v0  ;;  %v766_v38 = vpack.c.bf16 %v228_v35, %v227_v34  ;;  %v104_v39 = vld [vmem:[#allocation5 + $0x78] sm:$0xff]  ;;  %v229_v40 = vld [vmem:[#allocation7 + $0x50] sm:$0xff]  ;;  %v231_v44 = vld [vmem:[#allocation7 + $0x60] sm:$0xff] }
  0x53   :  { %758 = vmatpush3.bf16.msra.mxu1 %v757_v20  ;;  %v230_v41 = vld [vmem:[#allocation7 + $0x58] sm:$0xff]  ;;  %v751_v42 = vpack.c.bf16 %v104_v39, %v103_v37  ;;  %v232_v45 = vld [vmem:[#allocation7 + $0x68] sm:$0xff]  ;;  %v83_v48 = vld [vmem:[#allocation2 + $0x8] sm:$0xff] }
  0x54   :  { %759 = vmatprep.subr.bf16.mxu1 %v951_v0  ;;  %v769_v43 = vpack.c.bf16 %v230_v41, %v229_v40  ;;  %v82_v46 = vld [vmem:[#allocation2] sm:$0xff]  ;;  %v772_v47 = vpack.c.bf16 %v232_v45, %v231_v44  ;;  %v84_v49 = vld [vmem:[#allocation2 + $0x10] sm:$0xff]  ;;  %v85_v50 = vld [vmem:[#allocation2 + $0x18] sm:$0xff] }
  0x55   :  { %737 = vmatpush3.bf16.msra.mxu0 %v736_v10  ;;  %v86_v51 = vld [vmem:[#allocation2 + $0x20] sm:$0xff]  ;;  %v87_v52 = vld [vmem:[#allocation2 + $0x28] sm:$0xff]  ;;  %v88_v53 = vld [vmem:[#allocation2 + $0x30] sm:$0xff] }
  0x56   :  { %738 = vmatprep.subr.bf16.mxu0 %v951_v0  ;;  %v233_v54 = vld [vmem:[#allocation7 + $0x70] sm:$0xff]  ;;  %v234_v55 = vld [vmem:[#allocation7 + $0x78] sm:$0xff]  ;;  %v349_v57 = vld [vmem:[#allocation8] sm:$0xff] }
  0x57   :  { %761 = vmatpush3.bf16.msra.mxu1 %v760_v26  ;;  %v775_v56 = vpack.c.bf16 %v234_v55, %v233_v54  ;;  %v350_v58 = vld [vmem:[#allocation8 + $0x8] sm:$0xff]  ;;  %v351_v59 = vld [vmem:[#allocation8 + $0x10] sm:$0xff]  ;;  %v352_v61 = vld [vmem:[#allocation8 + $0x18] sm:$0xff] }
  0x58   :  { %762 = vmatprep.subr.bf16.mxu1 %v951_v0  ;;  %v778_v60 = vpack.c.bf16 %v350_v58, %v349_v57  ;;  %v781_v62 = vpack.c.bf16 %v352_v61, %v351_v59  ;;  %v353_v63 = vld [vmem:[#allocation8 + $0x20] sm:$0xff]  ;;  %v354_v2 = vld [vmem:[#allocation8 + $0x28] sm:$0xff]  ;;  %v355_v4 = vld [vmem:[#allocation8 + $0x30] sm:$0xff] }
  0x59   :  { %740 = vmatpush3.bf16.msra.mxu0 %v739_v18  ;;  %v784_v3 = vpack.c.bf16 %v354_v2, %v353_v63  ;;  %v356_v5 = vld [vmem:[#allocation8 + $0x38] sm:$0xff]  ;;  %v357_v7 = vld [vmem:[#allocation8 + $0x40] sm:$0xff]  ;;  %v358_v8 = vld [vmem:[#allocation8 + $0x48] sm:$0xff] }
  0x5a   :  { %741 = vmatprep.subr.bf16.mxu0 %v951_v0  ;;  %v787_v6 = vpack.c.bf16 %v356_v5, %v355_v4  ;;  %v790_v9 = vpack.c.bf16 %v358_v8, %v357_v7  ;;  %v359_v10 = vld [vmem:[#allocation8 + $0x50] sm:$0xff]  ;;  %v360_v11 = vld [vmem:[#allocation8 + $0x58] sm:$0xff]  ;;  %v361_v13 = vld [vmem:[#allocation8 + $0x60] sm:$0xff] }
  0x5b   :  { %764 = vmatpush3.bf16.msra.mxu1 %v763_v32  ;;  %v793_v12 = vpack.c.bf16 %v360_v11, %v359_v10  ;;  %v362_v14 = vld [vmem:[#allocation8 + $0x68] sm:$0xff]  ;;  %v363_v45 = vld [vmem:[#allocation8 + $0x70] sm:$0xff] }
  0x5c   :  { %765 = vmatprep.subr.bf16.mxu1 %v951_v0  ;;  %v796_v15 = vpack.c.bf16 %v362_v14, %v361_v13  ;;  %v498_v16 = vld [vmem:[%s1169_s2] ss:$0 sm:$0xff] }
  0x5d   :  { %743 = vmatpush3.bf16.msra.mxu0 %v742_v24  ;;  %v500_v14 = vld [vmem:[%s1173_s6] ss:$0 sm:$0xff]  ;;  %s954_s6 = smov [#allocation10]  }
  0x5e   :  { %744 = vmatprep.subr.bf16.mxu0 %v951_v0  ;;  %s484_s30 = sshll.u32 %s954_s6, 4  ;;  %s485_s30 = int_to_ptr.vmem [resolvable:$true] %s484_s30 }
  0x5f   :  { %767 = vmatpush3.bf16.msra.mxu1 %v766_v38  ;;  %s915_s8 = scalar_lea.vmem %s485_s30, 896  ;;  %p920_p5 = scmp.lt.s32.totalorder %s485_s30, %s485_s30 }
  0x60   :  { %768 = vmatprep.subr.bf16.mxu1 %v951_v0  ;;  %p916_p4 = scmp.ne.s32.totalorder %s485_s30, %s915_s8  ;;  %p921_p6 = scmp.lt.s32.totalorder %s915_s8, %s915_s8 }
  0x61   :  { %746 = vmatpush3.bf16.msra.mxu0 %v745_v30 }
  0x62   :  { %747 = vmatprep.subr.bf16.mxu0 %v951_v0  ;;  %p922_p7 = por %p921_p6, %p920_p5 }
  0x63   :  { %770 = vmatpush3.bf16.msra.mxu1 %v769_v43 }
  0x64   :  { %771 = vmatprep.subr.bf16.mxu1 %v951_v0  ;;  %p923_p8 = pnand %p922_p7, %p916_p4 }
  0x65   :  { %749 = vmatpush3.bf16.msra.mxu0 %v748_v36 }
  0x66   :  { %750 = vmatprep.subr.bf16.mxu0 %v951_v0 }
  0x67   :  { %773 = vmatpush3.bf16.msra.mxu1 %v772_v47 }
  0x68   :  { %774 = vmatprep.subr.bf16.mxu1 %v951_v0 }
  0x69   :  { %752 = vmatpush3.bf16.msra.mxu0 %v751_v42 }
  0x6a   :  { %777 = vmatprep.subr.bf16.mxu0 %v951_v0 }
  0x6b   :  { %776 = vmatpush3.bf16.msra.mxu1 %v775_v56 }
  0x6c   :  { %603 = vmatmul.mubr.f32.vlgmr.msra.gmra.mrb[0].mxu0 %v82_v46  ;;  %801 = vmatprep.subr.bf16.mxu1 %v951_v0  ;;  %v364_v46 = vld [vmem:[#allocation8 + $0x78] sm:$0xff] }
  0x6d   :  { %605 = vmatprep.mubr.msk.f32.mxu0 %vm952_vm0, %v953_v1  ;;  %779 = vmatpush3.bf16.msra.mxu0 %v778_v60  ;;  %v799_v47 = vpack.c.bf16 %v364_v46, %v363_v45 }
  0x6e   :  { %780 = vmatprep.subr.bf16.mxu0 %v951_v0 }
  0x70   :  { %606 = vmatmul.mubr.f32.gmra.mrb[2].mxu0 %v83_v48  ;;  %v499_v48 = vld [vmem:[%s1171_s4] ss:$0 sm:$0xff] }
  0x71   :  { %608 = vmatprep.mubr.msk.f32.mxu0 %vm952_vm0, %v953_v1  ;;  %782 = vmatpush3.bf16.msra.mxu0 %v781_v62 }
  0x72   :  { %783 = vmatprep.subr.bf16.mxu0 %v951_v0 }
  0x74   :  { %609 = vmatmul.mubr.f32.gmra.mrb[4].mxu0 %v84_v49 }
  0x75   :  { %611 = vmatprep.mubr.msk.f32.mxu0 %vm952_vm0, %v953_v1  ;;  %785 = vmatpush3.bf16.msra.mxu0 %v784_v3 }
  0x76   :  { %786 = vmatprep.subr.bf16.mxu0 %v951_v0 }
  0x78   :  { %612 = vmatmul.mubr.f32.gmra.mrb[6].mxu0 %v85_v50 }
  0x79   :  { %614 = vmatprep.mubr.msk.f32.mxu0 %vm952_vm0, %v953_v1  ;;  %788 = vmatpush3.bf16.msra.mxu0 %v787_v6 }
  0x7a   :  { %789 = vmatprep.subr.bf16.mxu0 %v951_v0 }
  0x7c   :  { %615 = vmatmul.mubr.f32.gmra.mrb[8].mxu0 %v86_v51 }
  0x7d   :  { %617 = vmatprep.mubr.msk.f32.mxu0 %vm952_vm0, %v953_v1  ;;  %791 = vmatpush3.bf16.msra.mxu0 %v790_v9 }
  0x7e   :  { %792 = vmatprep.subr.bf16.mxu0 %v951_v0 }
  0x80   :  { %618 = vmatmul.mubr.f32.gmra.mrb[10].mxu0 %v87_v52 }
  0x81   :  { %620 = vmatprep.mubr.msk.f32.mxu0 %vm952_vm0, %v953_v1  ;;  %794 = vmatpush3.bf16.msra.mxu0 %v793_v12 }
  0x82   :  { %795 = vmatprep.subr.bf16.mxu0 %v951_v0 }
  0x84   :  { %621 = vmatmul.mubr.f32.gmra.mrb[12].mxu0 %v88_v53 }
  0x85   :  { %708 = vmatprep.mubr.msk.f32.mxu0 %vm952_vm0, %v953_v1  ;;  %797 = vmatpush3.bf16.msra.mxu0 %v796_v15 }
  0x86   :  { %798 = vmatprep.subr.bf16.mxu0 %v951_v0 }
  0x89   :  { %800 = vmatpush3.bf16.msra.mxu0 %v799_v47 }
 0x13f   :  { %v178_v17 = vpop.f32.mrb[0].mxu0 }
 0x140   :  { %v179_v18 = vadd.f32 %v498_v16, %v178_v17  ;;  %v604_v19 = vpop.f32.mrb[1].mxu0 }
 0x142   :  { %v212_v20 = vmax.f32 %v179_v18, 0.0 }
 0x143   :  { %v183_v21 = vpop.f32.mrb[2].mxu0 }
 0x144   :  { %v184_v22 = vadd.f32 %v498_v16, %v183_v21  ;;  %v607_v23 = vpop.f32.mrb[3].mxu0  ;;  %656 = vmatmul.mubr.f32.vlgmr.msra.gmra.mrb[0].mxu1 %v212_v20 }
 0x145   :  { %658 = vmatprep.mubr.msk.f32.mxu1 %vm952_vm0, %v953_v1  ;;  %809 = vmatpush3.bf16.msra.mxu1 %v778_v60 }
 0x146   :  { %v213_v24 = vmax.f32 %v184_v22, 0.0  ;;  %802 = vmatprep.subr.bf16.mxu1 %v951_v0 }
 0x147   :  { %v188_v25 = vpop.f32.mrb[4].mxu0 }
 0x148   :  { %v189_v26 = vadd.f32 %v498_v16, %v188_v25  ;;  %v610_v27 = vpop.f32.mrb[5].mxu0  ;;  %659 = vmatmul.mubr.f32.gmra.mrb[2].mxu1 %v213_v24 }
 0x149   :  { %661 = vmatprep.mubr.msk.f32.mxu1 %vm952_vm0, %v953_v1  ;;  %810 = vmatpush3.bf16.msra.mxu1 %v781_v62 }
 0x14a   :  { %v214_v28 = vmax.f32 %v189_v26, 0.0  ;;  %803 = vmatprep.subr.bf16.mxu1 %v951_v0 }
 0x14b   :  { %v193_v29 = vpop.f32.mrb[6].mxu0 }
 0x14c   :  { %v194_v30 = vadd.f32 %v498_v16, %v193_v29  ;;  %v613_v31 = vpop.f32.mrb[7].mxu0  ;;  %662 = vmatmul.mubr.f32.gmra.mrb[4].mxu1 %v214_v28 }
 0x14d   :  { %664 = vmatprep.mubr.msk.f32.mxu1 %vm952_vm0, %v953_v1  ;;  %811 = vmatpush3.bf16.msra.mxu1 %v784_v3 }
 0x14e   :  { %v215_v32 = vmax.f32 %v194_v30, 0.0  ;;  %804 = vmatprep.subr.bf16.mxu1 %v951_v0 }
 0x14f   :  { %v198_v33 = vpop.f32.mrb[8].mxu0 }
 0x150   :  { %v199_v34 = vadd.f32 %v498_v16, %v198_v33  ;;  %v616_v35 = vpop.f32.mrb[9].mxu0  ;;  %665 = vmatmul.mubr.f32.gmra.mrb[6].mxu1 %v215_v32 }
 0x151   :  { %667 = vmatprep.mubr.msk.f32.mxu1 %vm952_vm0, %v953_v1  ;;  %812 = vmatpush3.bf16.msra.mxu1 %v787_v6 }
 0x152   :  { %v216_v36 = vmax.f32 %v199_v34, 0.0  ;;  %805 = vmatprep.subr.bf16.mxu1 %v951_v0 }
 0x153   :  { %v203_v37 = vpop.f32.mrb[10].mxu0 }
 0x154   :  { %v204_v38 = vadd.f32 %v498_v16, %v203_v37  ;;  %v619_v39 = vpop.f32.mrb[11].mxu0  ;;  %668 = vmatmul.mubr.f32.gmra.mrb[8].mxu1 %v216_v36 }
 0x155   :  { %670 = vmatprep.mubr.msk.f32.mxu1 %vm952_vm0, %v953_v1  ;;  %813 = vmatpush3.bf16.msra.mxu1 %v790_v9 }
 0x156   :  { %v217_v40 = vmax.f32 %v204_v38, 0.0  ;;  %806 = vmatprep.subr.bf16.mxu1 %v951_v0 }
 0x157   :  { %v208_v41 = vpop.f32.mrb[12].mxu0 }
 0x158   :  { %v209_v42 = vadd.f32 %v498_v16, %v208_v41  ;;  %v622_v43 = vpop.f32.mrb[13].mxu0  ;;  %671 = vmatmul.mubr.f32.gmra.mrb[10].mxu1 %v217_v40 }
 0x159   :  { %673 = vmatprep.mubr.msk.f32.mxu1 %vm952_vm0, %v953_v1  ;;  %814 = vmatpush3.bf16.msra.mxu1 %v793_v12 }
 0x15a   :  { %v218_v44 = vmax.f32 %v209_v42, 0.0  ;;  %807 = vmatprep.subr.bf16.mxu1 %v951_v0 }
 0x15c   :  { %674 = vmatmul.mubr.f32.gmra.mrb[12].mxu1 %v218_v44 }
 0x15d   :  { %815 = vmatpush3.bf16.msra.mxu1 %v796_v15  ;;  %720 = vmatprep.mubr.msk.f32.mxu1 %vm952_vm0, %v953_v1 }
 0x15e   :  { %808 = vmatprep.subr.bf16.mxu1 %v951_v0 }
 0x161   :  { %816 = vmatpush3.bf16.msra.mxu1 %v799_v47 }
 0x217   :  { %v308_v49 = vpop.f32.mrb[0].mxu1 }
 0x218   :  { %v309_v50 = vadd.f32 %v499_v48, %v308_v49  ;;  %v657_v51 = vpop.f32.mrb[1].mxu1 }
 0x21a   :  { %v342_v52 = vmax.f32 %v309_v50, 0.0 }
 0x21b   :  { %v313_v53 = vpop.f32.mrb[2].mxu1 }
 0x21c   :  { %v314_v54 = vadd.f32 %v499_v48, %v313_v53  ;;  %v660_v55 = vpop.f32.mrb[3].mxu1  ;;  %709 = vmatmul.mubr.f32.vlgmr.msra.gmra.mrb[14].mxu0 %v342_v52 }
 0x21d   :  { %711 = vmatprep.mubr.msk.f32.mxu0 %vm952_vm0, %v953_v1 }
 0x21e   :  { %v343_v0 = vmax.f32 %v314_v54, 0.0 }
 0x21f   :  { %v318_v56 = vpop.f32.mrb[4].mxu1 }
 0x220   :  { %v319_v57 = vadd.f32 %v499_v48, %v318_v56  ;;  %v663_v58 = vpop.f32.mrb[5].mxu1  ;;  %712 = vmatmul.mubr.f32.gmra.mrb[16].mxu0 %v343_v0 }
 0x221   :  { %714 = vmatprep.mubr.msk.f32.mxu0 %vm952_vm0, %v953_v1 }
 0x222   :  { %v344_v59 = vmax.f32 %v319_v57, 0.0 }
 0x223   :  { %v323_v60 = vpop.f32.mrb[6].mxu1 }
 0x224   :  { %v324_v61 = vadd.f32 %v499_v48, %v323_v60  ;;  %v666_v62 = vpop.f32.mrb[7].mxu1  ;;  %715 = vmatmul.mubr.f32.gmra.mrb[18].mxu0 %v344_v59 }
 0x225   :  { %717 = vmatprep.mubr.msk.f32.mxu0 %vm952_vm0, %v953_v1 }
 0x226   :  { %v345_v63 = vmax.f32 %v324_v61, 0.0 }
 0x227   :  { %v328_v2 = vpop.f32.mrb[8].mxu1 }
 0x228   :  { %v329_v3 = vadd.f32 %v499_v48, %v328_v2  ;;  %v669_v4 = vpop.f32.mrb[9].mxu1  ;;  %718 = vmatmul.mubr.f32.gmra.mrb[20].mxu0 %v345_v63 }
 0x22a   :  { %v346_v5 = vmax.f32 %v329_v3, 0.0 }
 0x22b   :  { %v333_v6 = vpop.f32.mrb[10].mxu1 }
 0x22c   :  { %v334_v7 = vadd.f32 %v499_v48, %v333_v6  ;;  %v672_v8 = vpop.f32.mrb[11].mxu1  ;;  %721 = vmatmul.mubr.f32.vlgmr.msra.gmra.mrb[14].mxu1 %v346_v5 }
 0x22d   :  { %723 = vmatprep.mubr.msk.f32.mxu1 %vm952_vm0, %v953_v1 }
 0x22e   :  { %v347_v9 = vmax.f32 %v334_v7, 0.0 }
 0x22f   :  { %v338_v10 = vpop.f32.mrb[12].mxu1 }
 0x230   :  { %v339_v11 = vadd.f32 %v499_v48, %v338_v10  ;;  %v675_v12 = vpop.f32.mrb[13].mxu1  ;;  %724 = vmatmul.mubr.f32.gmra.mrb[16].mxu1 %v347_v9 }
 0x231   :  { %726 = vmatprep.mubr.msk.f32.mxu1 %vm952_vm0, %v953_v1 }
 0x232   :  { %v348_v13 = vmax.f32 %v339_v11, 0.0 }
 0x234   :  { %727 = vmatmul.mubr.f32.gmra.mrb[18].mxu1 %v348_v13 }
 0x2ef   :  { %v438_v15 = vpop.f32.mrb[14].mxu0 }
 0x2f0   :  { %v439_v16 = vadd.f32 %v500_v14, %v438_v15  ;;  %v710_v17 = vpop.f32.mrb[15].mxu0 }
 0x2f2   :  { %472 = vst [vmem:[#allocation10] sm:$0xff] %v439_v16 }
 0x2f3   :  { %v443_v18 = vpop.f32.mrb[16].mxu0 }
 0x2f4   :  { %v444_v19 = vadd.f32 %v500_v14, %v443_v18  ;;  %v713_v20 = vpop.f32.mrb[17].mxu0 }
 0x2f6   :  { %473 = vst [vmem:[#allocation10 + $0x8] sm:$0xff] %v444_v19 }
 0x2f7   :  { %v448_v21 = vpop.f32.mrb[18].mxu0 }
 0x2f8   :  { %v449_v22 = vadd.f32 %v500_v14, %v448_v21  ;;  %v716_v23 = vpop.f32.mrb[19].mxu0 }
 0x2fa   :  { %474 = vst [vmem:[#allocation10 + $0x10] sm:$0xff] %v449_v22 }
 0x2fb   :  { %v453_v24 = vpop.f32.mrb[20].mxu0 }
 0x2fc   :  { %v454_v1 = vadd.f32 %v500_v14, %v453_v24  ;;  %v719_v25 = vpop.f32.mrb[21].mxu0 }
 0x2fe   :  { %475 = vst [vmem:[#allocation10 + $0x18] sm:$0xff] %v454_v1 }
 0x2ff   :  { %v458_v26 = vpop.f32.mrb[14].mxu1 }
 0x300   :  { %v459_v27 = vadd.f32 %v500_v14, %v458_v26  ;;  %v722_v28 = vpop.f32.mrb[15].mxu1 }
 0x302   :  { %476 = vst [vmem:[#allocation10 + $0x20] sm:$0xff] %v459_v27 }
 0x303   :  { %v463_v29 = vpop.f32.mrb[16].mxu1 }
 0x304   :  { %v464_v30 = vadd.f32 %v500_v14, %v463_v29  ;;  %v725_v31 = vpop.f32.mrb[17].mxu1 }
 0x306   :  { %477 = vst [vmem:[#allocation10 + $0x28] sm:$0xff] %v464_v30 }
 0x307   :  { %v468_v32 = vpop.f32.mrb[18].mxu1 }
 0x308   :  { %v469_v33 = vadd.f32 %v500_v14, %v468_v32  ;;  %v728_v34 = vpop.f32.mrb[19].mxu1 }
 0x30a   :  { %478 = vst [vmem:[#allocation10 + $0x30] sm:$0xff] %v469_v33 }
 0x30b   :  { %926 = shalt.err (!%p923_p8)
}
 0x30c   :  { %s927_s11 = scalar_lea.hbm %s1174_s7, 896 }
 0x30d   :  { %p928_p9 = scmp.ne.s32.totalorder %s1174_s7, %s927_s11  ;;  %p931_p10 = scmp.lt.u32.totalorder %s927_s11, %s1174_s7 }
 0x30f   :  { %p933_p11 = pnand %p931_p10, %p928_p9 }
 0x311   :  { %936 = shalt.err (!%p933_p11)
}
 0x312   :  { %490 = dma.vmem_to_hbm [thread:$0]  %s485_s30, 896, %s1174_s7, [#allocation4], %s947_s13, %s947_s13, %s948_s14  }
 0x313   :  { %943 = dma.done.wait [#allocation4], 896  }
 0x314   :  { %944 = vsyncadd [#allocation4], 4294966400 }
 0x315   :  { %494 = vsyncpa [#allocation3], 1 }
 0x316   :  { %495 = vsyncpa [#allocation6], 1 }
 0x317   :  { %496 = vsyncpa [#allocation9], 1 }
 0x318   :  { %497 = vsyncpa [#allocation4], 1 }

</bundles_post_ra>
